<compile_context>
chip_gen: v7x
topology: tpu7x:2x2x1
jax: 0.10.0
libtpu: 0.0.40
codegen_flags: <defaults>
</compile_context>

<pallas_src>
import jax
import jax.numpy as jnp
from jax.experimental import pallas as pl
from jax.experimental.pallas import tpu as pltpu


MATMUL_DTYPE = jnp.bfloat16   # MXU-native; pass jnp.float32 for bit-closer math


def _round_up(x, m):
    return (x + m - 1) // m * m


# ----------------------------------------------------------------------------
# Pallas kernel
# ----------------------------------------------------------------------------
def make_decoder_kernel(L, T, B_real, Bp, E, H, O_pad, mm_dtype):
    """B_real = logical batch, Bp = sublane-padded batch, O_pad = lane-dense out."""

    def kernel(*refs):
        it = iter(refs)
        tok_ref = next(it)                  # (T*B_real,) int32   SMEM
        emb_ref = next(it)                  # (V, E)      f32     VMEM
        h0_ref = next(it)                   # (L, Bp, H)  f32
        c0_ref = next(it)                   # (L, Bp, H)  f32
        layer_w = [(next(it), next(it), next(it)) for _ in range(L)]
        w_out_ref = next(it)                # (H, O_pad)  mm_dtype
        b_out_ref = next(it)                # (1, O_pad)  f32
        y_ref = next(it)                    # (T*Bp, O_pad) f32   out
        hn_ref = next(it)                   # (L, Bp, H)  f32     out
        cn_ref = next(it)                   # (L, Bp, H)  f32     out
        x_scr = next(it)                    # (T*Bp, E)   f32     scratch
        pre_scr = next(it)                  # (T*Bp, 4H)  f32     scratch
        ho_scr = next(it)                   # (T*Bp, H)   f32     scratch

        # ------------------------------------------------------------------
        # Fused embedding gather: build the time-major (T*Bp, E) slab in VMEM.
        # Padded batch rows stay zero (their downstream garbage is row-confined
        # and sliced off in the wrapper).
        # ------------------------------------------------------------------
        x_scr[...] = jnp.zeros((T * Bp, E), jnp.float32)
        for t in range(T):
            for b in range(B_real):
                tok = tok_ref[t * B_real + b]                  # SMEM scalar read
                r = t * Bp + b
                x_scr[r:r + 1, :] = emb_ref[pl.ds(tok, 1), :]  # dynamic row gather

        # Hoist weight loads once (tiny; values stay resident).
        W_ih = [layer_w[l][0][...] for l in range(L)]          # mm_dtype
        W_hh = [layer_w[l][1][...] for l in range(L)]          # mm_dtype
        Bias = [layer_w[l][2][...] for l in range(L)]          # f32 (b_ih + b_hh)

        # Layer-0 input projection hoisted off the recurrence: one big matmul,
        # result spilled to VMEM so only one (Bp,4H) slice is live per step.
        pre_scr[...] = jnp.dot(x_scr[...].astype(mm_dtype), W_ih[0],
                               preferred_element_type=jnp.float32) + Bias[0]

        h = [h0_ref[l] for l in range(L)]                      # (Bp,H) f32 state
        c = [c0_ref[l] for l in range(L)]
        h_fwd = [None] * L                                     # latest h per layer (mm_dtype)

        def lstm_step(l, gate_in, h_l, c_l):
            # gate_in already holds the x-side projection + bias (f32, (Bp,4H)).
            # Only h@W_hh sits on the serial path.  h is re-cast to bf16 per step
            # for the MXU; the f32 state carries the recurrence (drift stays tiny
            # at T=8 — see correctness note in wrapper docstring).
            gates = gate_in + jnp.dot(h_l.astype(mm_dtype), W_hh[l],
                                      preferred_element_type=jnp.float32)
            # Full-vreg nonlinearities over the whole (Bp, 4H) = (8,128) tile;
            # slice i/f/o from sig and g from tnh (PyTorch gate order i,f,g,o).
            sig = jax.nn.sigmoid(gates)
            tnh = jnp.tanh(gates)
            i_g = sig[:, 0 * H:1 * H]
            f_g = sig[:, 1 * H:2 * H]
            g_g = tnh[:, 2 * H:3 * H]
            o_g = sig[:, 3 * H:4 * H]
            c_new = f_g * c_l + i_g * g_g
            h_new = o_g * jnp.tanh(c_new)
            return h_new, c_new

        # ------------------------------------------------------------------
        # Wavefront schedule: at diagonal d, layer l runs step t = d - l, so
        # layer 1 step t is independent of layer 0 step t+1 and the scheduler
        # can interleave the two serial chains.  Higher layers are emitted
        # first within a diagonal so they consume the previous layer's h from
        # the previous diagonal.
        # ------------------------------------------------------------------
        for d in range(T + L - 1):
            for l in range(min(L - 1, d), -1, -1):
                t = d - l
                if t < 0 or t >= T:
                    continue
                if l == 0:
                    gate_in = pre_scr[t * Bp:(t + 1) * Bp, :]
                else:
                    gate_in = jnp.dot(h_fwd[l - 1], W_ih[l],
                                      preferred_element_type=jnp.float32) + Bias[l]
                h[l], c[l] = lstm_step(l, gate_in, h[l], c[l])
                h_fwd[l] = h[l].astype(mm_dtype)
                if l == L - 1:
                    # Per-step store into the output slab (spare vst slot) —
                    # replaces outs.append + concatenate.
                    ho_scr[t * Bp:(t + 1) * Bp, :] = h[l]
        # TODO(synk): PyTorch applies inter-layer dropout in training mode only;
        # the inference forward is dropout-free, so none here.

        for l in range(L):
            hn_ref[l] = h[l]
            cn_ref[l] = c[l]

        # Output projection: single flat 2-D matmul, lane-dense O_pad columns
        # (unmasked vst since O_pad % 128 == 0).
        y = jnp.dot(ho_scr[...].astype(mm_dtype), w_out_ref[...],
                    preferred_element_type=jnp.float32) + b_out_ref[...]
        y_ref[...] = y

    return kernel


# ----------------------------------------------------------------------------
# Wrapper (padding, weight casting, pallas_call)
# ----------------------------------------------------------------------------
def decoder_forward(token_ids, emb_table, layer_params, w_out_T, b_out, h0, c0,
                    mm_dtype=MATMUL_DTYPE):
    """token_ids: (B, T) int32.  Returns (y (B,T,O), (h_n, c_n) each (L,B,H)).

    Implements Decoder.forward with length=None (no pack_padded_sequence path)
    and rnn_type='lstm'.
    """
    B, T = token_ids.shape
    V, E = emb_table.shape
    L, _, H = h0.shape
    O = w_out_T.shape[1]

    Bp = _round_up(B, 8)       # f32 sublane count
    Op = _round_up(O, 128)     # lane-dense output store

    # Token ids in time-major order; they ride into the kernel via SMEM.
    tok_tm = jnp.transpose(token_ids).reshape(T * B).astype(jnp.int32)

    if Bp != B:
        h0 = jnp.pad(h0, ((0, 0), (0, Bp - B), (0, 0)))
        c0 = jnp.pad(c0, ((0, 0), (0, Bp - B), (0, 0)))

    emb_f32 = emb_table.astype(jnp.float32)

    # Weights pre-cast to mm_dtype in the wrapper (no in-kernel cast passes,
    # half the weight DMA bytes in bf16 mode).  Biases stay f32.
    flat_w = []
    for (w_ih_T, w_hh_T, b) in layer_params:
        flat_w += [w_ih_T.astype(mm_dtype), w_hh_T.astype(mm_dtype),
                   b.astype(jnp.float32)]

    w_out_p = jnp.pad(w_out_T, ((0, 0), (0, Op - O))).astype(mm_dtype)
    b_out_p = jnp.pad(b_out, ((0, 0), (0, Op - O))).astype(jnp.float32)

    args = [tok_tm, emb_f32, h0, c0] + flat_w + [w_out_p, b_out_p]

    def full_spec(shape):
        nd = len(shape)
        return pl.BlockSpec(shape, lambda i, _nd=nd: (0,) * _nd)

    in_specs = [pl.BlockSpec(memory_space=pltpu.MemorySpace.SMEM)]   # token ids
    in_specs += [full_spec(a.shape) for a in args[1:]]

    out_shapes = (
        jax.ShapeDtypeStruct((T * Bp, Op), jnp.float32),
        jax.ShapeDtypeStruct((L, Bp, H), jnp.float32),
        jax.ShapeDtypeStruct((L, Bp, H), jnp.float32),
    )
    out_specs = (
        pl.BlockSpec((T * Bp, Op), lambda i: (0, 0)),
        pl.BlockSpec((L, Bp, H), lambda i: (0, 0, 0)),
        pl.BlockSpec((L, Bp, H), lambda i: (0, 0, 0)),
    )

    scratch_shapes = [
        pltpu.VMEM((T * Bp, E), jnp.float32),        # embedded-input slab
        pltpu.VMEM((T * Bp, 4 * H), jnp.float32),    # hoisted layer-0 pre-gates
        pltpu.VMEM((T * Bp, H), jnp.float32),        # last-layer hidden slab
    ]

    kernel = make_decoder_kernel(L, T, B, Bp, E, H, Op, mm_dtype)
    y_flat, h_n, c_n = pl.pallas_call(
        kernel,
        out_shape=out_shapes,
        grid=(1,),
        in_specs=in_specs,
        out_specs=out_specs,
        scratch_shapes=scratch_shapes,
        compiler_params=pltpu.CompilerParams(
            dimension_semantics=("arbitrary",),
            vmem_limit_bytes=32 << 20),
    )(*args)
    # TODO(synk): for non-trivial batches on v7x, add a "parallel" grid axis over
    # batch shards (2 TensorCores) with private (h, c) state per shard.

    y = y_flat[:, :O].reshape(T, Bp, O)[:, :B]       # drop col/row padding
    y = jnp.transpose(y, (1, 0, 2))                  # (B, T, O) batch_first
    return y, (h_n[:, :B], c_n[:, :B])


# ----------------------------------------------------------------------------
# Pure-JAX reference (mirrors torch.nn.LSTM semantics) for a sanity check
# ----------------------------------------------------------------------------
def decoder_reference(token_ids, emb_table, layer_params, w_out_T, b_out, h0, c0):
    B, T = token_ids.shape
    H = h0.shape[-1]
    outs = jnp.take(emb_table, token_ids, axis=0)        # (B, T, E)
    hs, cs = [], []
    for l, (w_ih_T, w_hh_T, b) in enumerate(layer_params):
        h, c = h0[l], c0[l]
        seq = []
        for t in range(T):
            g = outs[:, t] @ w_ih_T + h @ w_hh_T + b[0]
            i_g = jax.nn.sigmoid(g[:, :H])
            f_g = jax.nn.sigmoid(g[:, H:2 * H])
            g_g = jnp.tanh(g[:, 2 * H:3 * H])
            o_g = jax.nn.sigmoid(g[:, 3 * H:])
            c = f_g * c + i_g * g_g
            h = o_g * jnp.tanh(c)
            seq.append(h)
        outs = jnp.stack(seq, axis=1)
        hs.append(h)
        cs.append(c)
    y = outs @ w_out_T + b_out[0]
    return y, (jnp.stack(hs), jnp.stack(cs))


# ----------------------------------------------------------------------------
# Main
# ----------------------------------------------------------------------------
if __name__ == "__main__":
    # Module hyperparameters (rnn_type='lstm').
    vocab_size, emb_dim, pad_idx = 50, 32, 0
    hidden_size, output_size, n_layers = 32, 48, 2
    B, T = 2, 8
    E, H, O, L = emb_dim, hidden_size, output_size, n_layers

    key = jax.random.PRNGKey(0)
    keys = jax.random.split(key, 4 + 4 * L)

    # Embedding table (padding_idx row zeroed, as nn.Embedding does).
    emb_table = jax.random.normal(keys[0], (vocab_size, E), jnp.float32)
    emb_table = emb_table.at[pad_idx].set(0.0)

    # LSTM parameters, PyTorch layout transposed for x @ W usage; b = b_ih + b_hh.
    scale = 1.0 / jnp.sqrt(jnp.float32(H))
    layer_params = []
    for l in range(L):
        in_dim = E if l == 0 else H
        kw = keys[4 + 4 * l: 4 + 4 * (l + 1)]
        w_ih_T = jax.random.uniform(kw[0], (in_dim, 4 * H), jnp.float32, -scale, scale)
        w_hh_T = jax.random.uniform(kw[1], (H, 4 * H), jnp.float32, -scale, scale)
        b_ih = jax.random.uniform(kw[2], (4 * H,), jnp.float32, -scale, scale)
        b_hh = jax.random.uniform(kw[3], (4 * H,), jnp.float32, -scale, scale)
        layer_params.append((w_ih_T, w_hh_T, (b_ih + b_hh).reshape(1, 4 * H)))

    # out_proj (Linear(hidden_size, output_size)), transposed to (H, O).
    w_out_T = jax.random.uniform(keys[1], (H, O), jnp.float32, -scale, scale)
    b_out = jax.random.uniform(keys[2], (1, O), jnp.float32, -scale, scale)

    # Inputs and zero hidden state (get_zeros_hidden_state).
    token_ids = jax.random.randint(keys[3], (B, T), 0, vocab_size, jnp.int32)
    h0 = jnp.zeros((L, B, H), jnp.float32)
    c0 = jnp.zeros((L, B, H), jnp.float32)

    y_ref, (h_ref, c_ref) = decoder_reference(token_ids, emb_table, layer_params,
                                              w_out_T, b_out, h0, c0)

    # Fast path: bf16 MXU operands, f32 accumulation / gate math / state.
    y, (h_n, c_n) = decoder_forward(token_ids, emb_table, layer_params,
                                    w_out_T, b_out, h0, c0,
                                    mm_dtype=jnp.bfloat16)
    jax.block_until_ready((y, h_n, c_n))
    assert jnp.allclose(y, y_ref, atol=2e-2, rtol=2e-2)
    assert jnp.allclose(h_n, h_ref, atol=2e-2, rtol=2e-2)
    assert jnp.allclose(c_n, c_ref, atol=2e-2, rtol=2e-2)

    # f32 mode: verifies the wavefront restructuring preserves exact semantics.
    y32, (h32, c32) = decoder_forward(token_ids, emb_table, layer_params,
                                      w_out_T, b_out, h0, c0,
                                      mm_dtype=jnp.float32)
    jax.block_until_ready((y32, h32, c32))
    assert jnp.allclose(y32, y_ref, atol=1e-3, rtol=1e-3)
    assert jnp.allclose(h32, h_ref, atol=1e-3, rtol=1e-3)
    assert jnp.allclose(c32, c_ref, atol=1e-3, rtol=1e-3)

    print("KERNEL_OK")
</pallas_src>

<mosaic_0001>
module attributes {stable_mosaic.version = 11 : i64} {
  func.func @kernel(%arg0: i32, %arg1: memref<16xi32, #tpu.memory_space<smem>>, %arg2: memref<50x32xf32, #tpu.memory_space<vmem>>, %arg3: memref<2x8x32xf32, #tpu.memory_space<vmem>>, %arg4: memref<2x8x32xf32, #tpu.memory_space<vmem>>, %arg5: memref<32x128xbf16, #tpu.memory_space<vmem>>, %arg6: memref<32x128xbf16, #tpu.memory_space<vmem>>, %arg7: memref<1x128xf32, #tpu.memory_space<vmem>>, %arg8: memref<32x128xbf16, #tpu.memory_space<vmem>>, %arg9: memref<32x128xbf16, #tpu.memory_space<vmem>>, %arg10: memref<1x128xf32, #tpu.memory_space<vmem>>, %arg11: memref<32x128xbf16, #tpu.memory_space<vmem>>, %arg12: memref<1x128xf32, #tpu.memory_space<vmem>>, %arg13: memref<64x128xf32, #tpu.memory_space<vmem>>, %arg14: memref<2x8x32xf32, #tpu.memory_space<vmem>>, %arg15: memref<2x8x32xf32, #tpu.memory_space<vmem>>, %arg16: memref<64x32xf32, #tpu.memory_space<vmem>>, %arg17: memref<64x128xf32, #tpu.memory_space<vmem>>, %arg18: memref<64x32xf32, #tpu.memory_space<vmem>>) attributes {dimension_semantics = [#tpu.dimension_semantics<arbitrary>], iteration_bounds = array<i64: 1>, scalar_prefetch = 0 : i64, scratch_operands = 3 : i64, tpu.core_type = #tpu.core_type<tc>, window_params = [{transform_indices = @transform_0, window_bounds = array<i64: 16>}, {pipeline_mode = #tpu.pipeline_mode<synchronous>, transform_indices = @transform_1, window_bounds = array<i64: 50, 32>}, {pipeline_mode = #tpu.pipeline_mode<synchronous>, transform_indices = @transform_2, window_bounds = array<i64: 2, 8, 32>}, {pipeline_mode = #tpu.pipeline_mode<synchronous>, transform_indices = @transform_3, window_bounds = array<i64: 2, 8, 32>}, {pipeline_mode = #tpu.pipeline_mode<synchronous>, transform_indices = @transform_4, window_bounds = array<i64: 32, 128>}, {pipeline_mode = #tpu.pipeline_mode<synchronous>, transform_indices = @transform_5, window_bounds = array<i64: 32, 128>}, {pipeline_mode = #tpu.pipeline_mode<synchronous>, transform_indices = @transform_6, window_bounds = array<i64: 1, 128>}, {pipeline_mode = #tpu.pipeline_mode<synchronous>, transform_indices = @transform_7, window_bounds = array<i64: 32, 128>}, {pipeline_mode = #tpu.pipeline_mode<synchronous>, transform_indices = @transform_8, window_bounds = array<i64: 32, 128>}, {pipeline_mode = #tpu.pipeline_mode<synchronous>, transform_indices = @transform_9, window_bounds = array<i64: 1, 128>}, {pipeline_mode = #tpu.pipeline_mode<synchronous>, transform_indices = @transform_10, window_bounds = array<i64: 32, 128>}, {pipeline_mode = #tpu.pipeline_mode<synchronous>, transform_indices = @transform_11, window_bounds = array<i64: 1, 128>}, {pipeline_mode = #tpu.pipeline_mode<synchronous>, transform_indices = @transform_12, window_bounds = array<i64: 64, 128>}, {pipeline_mode = #tpu.pipeline_mode<synchronous>, transform_indices = @transform_13, window_bounds = array<i64: 2, 8, 32>}, {pipeline_mode = #tpu.pipeline_mode<synchronous>, transform_indices = @transform_14, window_bounds = array<i64: 2, 8, 32>}]} {
    %cst = arith.constant 0.000000e+00 : f32
    %0 = vector.broadcast %cst : f32 to vector<64x32xf32>
    %c0 = arith.constant 0 : index
    %c0_0 = arith.constant 0 : index
    %1 = vector.load %arg16[%c0, %c0_0] : memref<64x32xf32, #tpu.memory_space<vmem>>, vector<64x32xf32>
    tpu.vector_store %arg16[%c0, %c0_0], %0 {strides = array<i32>} : memref<64x32xf32, #tpu.memory_space<vmem>>, vector<64x32xf32>,
    %c0_1 = arith.constant 0 : index
    %2 = memref.load %arg1[%c0_1] : memref<16xi32, #tpu.memory_space<smem>>
    %3 = arith.index_cast %2 : i32 to index
    %c0_2 = arith.constant 0 : index
    %4 = vector.load %arg2[%3, %c0_2] : memref<50x32xf32, #tpu.memory_space<vmem>>, vector<1x32xf32>
    %c0_3 = arith.constant 0 : index
    %c0_4 = arith.constant 0 : index
    %5 = vector.load %arg16[%c0_3, %c0_4] : memref<64x32xf32, #tpu.memory_space<vmem>>, vector<1x32xf32>
    tpu.vector_store %arg16[%c0_3, %c0_4], %4 {strides = array<i32>} : memref<64x32xf32, #tpu.memory_space<vmem>>, vector<1x32xf32>,
    %c1 = arith.constant 1 : index
    %6 = memref.load %arg1[%c1] : memref<16xi32, #tpu.memory_space<smem>>
    %7 = arith.index_cast %6 : i32 to index
    %c0_5 = arith.constant 0 : index
    %8 = vector.load %arg2[%7, %c0_5] : memref<50x32xf32, #tpu.memory_space<vmem>>, vector<1x32xf32>
    %c1_6 = arith.constant 1 : index
    %c0_7 = arith.constant 0 : index
    %9 = vector.load %arg16[%c1_6, %c0_7] : memref<64x32xf32, #tpu.memory_space<vmem>>, vector<1x32xf32>
    tpu.vector_store %arg16[%c1_6, %c0_7], %8 {strides = array<i32>} : memref<64x32xf32, #tpu.memory_space<vmem>>, vector<1x32xf32>,
    %c2 = arith.constant 2 : index
    %10 = memref.load %arg1[%c2] : memref<16xi32, #tpu.memory_space<smem>>
    %11 = arith.index_cast %10 : i32 to index
    %c0_8 = arith.constant 0 : index
    %12 = vector.load %arg2[%11, %c0_8] : memref<50x32xf32, #tpu.memory_space<vmem>>, vector<1x32xf32>
    %c8 = arith.constant 8 : index
    %c0_9 = arith.constant 0 : index
    %13 = vector.load %arg16[%c8, %c0_9] : memref<64x32xf32, #tpu.memory_space<vmem>>, vector<1x32xf32>
    tpu.vector_store %arg16[%c8, %c0_9], %12 {strides = array<i32>} : memref<64x32xf32, #tpu.memory_space<vmem>>, vector<1x32xf32>,
    %c3 = arith.constant 3 : index
    %14 = memref.load %arg1[%c3] : memref<16xi32, #tpu.memory_space<smem>>
    %15 = arith.index_cast %14 : i32 to index
    %c0_10 = arith.constant 0 : index
    %16 = vector.load %arg2[%15, %c0_10] : memref<50x32xf32, #tpu.memory_space<vmem>>, vector<1x32xf32>
    %c9 = arith.constant 9 : index
    %c0_11 = arith.constant 0 : index
    %17 = vector.load %arg16[%c9, %c0_11] : memref<64x32xf32, #tpu.memory_space<vmem>>, vector<1x32xf32>
    tpu.vector_store %arg16[%c9, %c0_11], %16 {strides = array<i32>} : memref<64x32xf32, #tpu.memory_space<vmem>>, vector<1x32xf32>,
    %c4 = arith.constant 4 : index
    %18 = memref.load %arg1[%c4] : memref<16xi32, #tpu.memory_space<smem>>
    %19 = arith.index_cast %18 : i32 to index
    %c0_12 = arith.constant 0 : index
    %20 = vector.load %arg2[%19, %c0_12] : memref<50x32xf32, #tpu.memory_space<vmem>>, vector<1x32xf32>
    %c16 = arith.constant 16 : index
    %c0_13 = arith.constant 0 : index
    %21 = vector.load %arg16[%c16, %c0_13] : memref<64x32xf32, #tpu.memory_space<vmem>>, vector<1x32xf32>
    tpu.vector_store %arg16[%c16, %c0_13], %20 {strides = array<i32>} : memref<64x32xf32, #tpu.memory_space<vmem>>, vector<1x32xf32>,
    %c5 = arith.constant 5 : index
    %22 = memref.load %arg1[%c5] : memref<16xi32, #tpu.memory_space<smem>>
    %23 = arith.index_cast %22 : i32 to index
    %c0_14 = arith.constant 0 : index
    %24 = vector.load %arg2[%23, %c0_14] : memref<50x32xf32, #tpu.memory_space<vmem>>, vector<1x32xf32>
    %c17 = arith.constant 17 : index
    %c0_15 = arith.constant 0 : index
    %25 = vector.load %arg16[%c17, %c0_15] : memref<64x32xf32, #tpu.memory_space<vmem>>, vector<1x32xf32>
    tpu.vector_store %arg16[%c17, %c0_15], %24 {strides = array<i32>} : memref<64x32xf32, #tpu.memory_space<vmem>>, vector<1x32xf32>,
    %c6 = arith.constant 6 : index
    %26 = memref.load %arg1[%c6] : memref<16xi32, #tpu.memory_space<smem>>
    %27 = arith.index_cast %26 : i32 to index
    %c0_16 = arith.constant 0 : index
    %28 = vector.load %arg2[%27, %c0_16] : memref<50x32xf32, #tpu.memory_space<vmem>>, vector<1x32xf32>
    %c24 = arith.constant 24 : index
    %c0_17 = arith.constant 0 : index
    %29 = vector.load %arg16[%c24, %c0_17] : memref<64x32xf32, #tpu.memory_space<vmem>>, vector<1x32xf32>
    tpu.vector_store %arg16[%c24, %c0_17], %28 {strides = array<i32>} : memref<64x32xf32, #tpu.memory_space<vmem>>, vector<1x32xf32>,
    %c7 = arith.constant 7 : index
    %30 = memref.load %arg1[%c7] : memref<16xi32, #tpu.memory_space<smem>>
    %31 = arith.index_cast %30 : i32 to index
    %c0_18 = arith.constant 0 : index
    %32 = vector.load %arg2[%31, %c0_18] : memref<50x32xf32, #tpu.memory_space<vmem>>, vector<1x32xf32>
    %c25 = arith.constant 25 : index
    %c0_19 = arith.constant 0 : index
    %33 = vector.load %arg16[%c25, %c0_19] : memref<64x32xf32, #tpu.memory_space<vmem>>, vector<1x32xf32>
    tpu.vector_store %arg16[%c25, %c0_19], %32 {strides = array<i32>} : memref<64x32xf32, #tpu.memory_space<vmem>>, vector<1x32xf32>,
    %c8_20 = arith.constant 8 : index
    %34 = memref.load %arg1[%c8_20] : memref<16xi32, #tpu.memory_space<smem>>
    %35 = arith.index_cast %34 : i32 to index
    %c0_21 = arith.constant 0 : index
    %36 = vector.load %arg2[%35, %c0_21] : memref<50x32xf32, #tpu.memory_space<vmem>>, vector<1x32xf32>
    %c32 = arith.constant 32 : index
    %c0_22 = arith.constant 0 : index
    %37 = vector.load %arg16[%c32, %c0_22] : memref<64x32xf32, #tpu.memory_space<vmem>>, vector<1x32xf32>
    tpu.vector_store %arg16[%c32, %c0_22], %36 {strides = array<i32>} : memref<64x32xf32, #tpu.memory_space<vmem>>, vector<1x32xf32>,
    %c9_23 = arith.constant 9 : index
    %38 = memref.load %arg1[%c9_23] : memref<16xi32, #tpu.memory_space<smem>>
    %39 = arith.index_cast %38 : i32 to index
    %c0_24 = arith.constant 0 : index
    %40 = vector.load %arg2[%39, %c0_24] : memref<50x32xf32, #tpu.memory_space<vmem>>, vector<1x32xf32>
    %c33 = arith.constant 33 : index
    %c0_25 = arith.constant 0 : index
    %41 = vector.load %arg16[%c33, %c0_25] : memref<64x32xf32, #tpu.memory_space<vmem>>, vector<1x32xf32>
    tpu.vector_store %arg16[%c33, %c0_25], %40 {strides = array<i32>} : memref<64x32xf32, #tpu.memory_space<vmem>>, vector<1x32xf32>,
    %c10 = arith.constant 10 : index
    %42 = memref.load %arg1[%c10] : memref<16xi32, #tpu.memory_space<smem>>
    %43 = arith.index_cast %42 : i32 to index
    %c0_26 = arith.constant 0 : index
    %44 = vector.load %arg2[%43, %c0_26] : memref<50x32xf32, #tpu.memory_space<vmem>>, vector<1x32xf32>
    %c40 = arith.constant 40 : index
    %c0_27 = arith.constant 0 : index
    %45 = vector.load %arg16[%c40, %c0_27] : memref<64x32xf32, #tpu.memory_space<vmem>>, vector<1x32xf32>
    tpu.vector_store %arg16[%c40, %c0_27], %44 {strides = array<i32>} : memref<64x32xf32, #tpu.memory_space<vmem>>, vector<1x32xf32>,
    %c11 = arith.constant 11 : index
    %46 = memref.load %arg1[%c11] : memref<16xi32, #tpu.memory_space<smem>>
    %47 = arith.index_cast %46 : i32 to index
    %c0_28 = arith.constant 0 : index
    %48 = vector.load %arg2[%47, %c0_28] : memref<50x32xf32, #tpu.memory_space<vmem>>, vector<1x32xf32>
    %c41 = arith.constant 41 : index
    %c0_29 = arith.constant 0 : index
    %49 = vector.load %arg16[%c41, %c0_29] : memref<64x32xf32, #tpu.memory_space<vmem>>, vector<1x32xf32>
    tpu.vector_store %arg16[%c41, %c0_29], %48 {strides = array<i32>} : memref<64x32xf32, #tpu.memory_space<vmem>>, vector<1x32xf32>,
    %c12 = arith.constant 12 : index
    %50 = memref.load %arg1[%c12] : memref<16xi32, #tpu.memory_space<smem>>
    %51 = arith.index_cast %50 : i32 to index
    %c0_30 = arith.constant 0 : index
    %52 = vector.load %arg2[%51, %c0_30] : memref<50x32xf32, #tpu.memory_space<vmem>>, vector<1x32xf32>
    %c48 = arith.constant 48 : index
    %c0_31 = arith.constant 0 : index
    %53 = vector.load %arg16[%c48, %c0_31] : memref<64x32xf32, #tpu.memory_space<vmem>>, vector<1x32xf32>
    tpu.vector_store %arg16[%c48, %c0_31], %52 {strides = array<i32>} : memref<64x32xf32, #tpu.memory_space<vmem>>, vector<1x32xf32>,
    %c13 = arith.constant 13 : index
    %54 = memref.load %arg1[%c13] : memref<16xi32, #tpu.memory_space<smem>>
    %55 = arith.index_cast %54 : i32 to index
    %c0_32 = arith.constant 0 : index
    %56 = vector.load %arg2[%55, %c0_32] : memref<50x32xf32, #tpu.memory_space<vmem>>, vector<1x32xf32>
    %c49 = arith.constant 49 : index
    %c0_33 = arith.constant 0 : index
    %57 = vector.load %arg16[%c49, %c0_33] : memref<64x32xf32, #tpu.memory_space<vmem>>, vector<1x32xf32>
    tpu.vector_store %arg16[%c49, %c0_33], %56 {strides = array<i32>} : memref<64x32xf32, #tpu.memory_space<vmem>>, vector<1x32xf32>,
    %c14 = arith.constant 14 : index
    %58 = memref.load %arg1[%c14] : memref<16xi32, #tpu.memory_space<smem>>
    %59 = arith.index_cast %58 : i32 to index
    %c0_34 = arith.constant 0 : index
    %60 = vector.load %arg2[%59, %c0_34] : memref<50x32xf32, #tpu.memory_space<vmem>>, vector<1x32xf32>
    %c56 = arith.constant 56 : index
    %c0_35 = arith.constant 0 : index
    %61 = vector.load %arg16[%c56, %c0_35] : memref<64x32xf32, #tpu.memory_space<vmem>>, vector<1x32xf32>
    tpu.vector_store %arg16[%c56, %c0_35], %60 {strides = array<i32>} : memref<64x32xf32, #tpu.memory_space<vmem>>, vector<1x32xf32>,
    %c15 = arith.constant 15 : index
    %62 = memref.load %arg1[%c15] : memref<16xi32, #tpu.memory_space<smem>>
    %63 = arith.index_cast %62 : i32 to index
    %c0_36 = arith.constant 0 : index
    %64 = vector.load %arg2[%63, %c0_36] : memref<50x32xf32, #tpu.memory_space<vmem>>, vector<1x32xf32>
    %c57 = arith.constant 57 : index
    %c0_37 = arith.constant 0 : index
    %65 = vector.load %arg16[%c57, %c0_37] : memref<64x32xf32, #tpu.memory_space<vmem>>, vector<1x32xf32>
    tpu.vector_store %arg16[%c57, %c0_37], %64 {strides = array<i32>} : memref<64x32xf32, #tpu.memory_space<vmem>>, vector<1x32xf32>,
    %c0_38 = arith.constant 0 : index
    %c0_39 = arith.constant 0 : index
    %66 = vector.load %arg5[%c0_38, %c0_39] : memref<32x128xbf16, #tpu.memory_space<vmem>>, vector<32x128xbf16>
    %c0_40 = arith.constant 0 : index
    %c0_41 = arith.constant 0 : index
    %67 = vector.load %arg8[%c0_40, %c0_41] : memref<32x128xbf16, #tpu.memory_space<vmem>>, vector<32x128xbf16>
    %c0_42 = arith.constant 0 : index
    %c0_43 = arith.constant 0 : index
    %68 = vector.load %arg6[%c0_42, %c0_43] : memref<32x128xbf16, #tpu.memory_space<vmem>>, vector<32x128xbf16>
    %c0_44 = arith.constant 0 : index
    %c0_45 = arith.constant 0 : index
    %69 = vector.load %arg9[%c0_44, %c0_45] : memref<32x128xbf16, #tpu.memory_space<vmem>>, vector<32x128xbf16>
    %c0_46 = arith.constant 0 : index
    %c0_47 = arith.constant 0 : index
    %70 = vector.load %arg7[%c0_46, %c0_47] : memref<1x128xf32, #tpu.memory_space<vmem>>, vector<1x128xf32>
    %c0_48 = arith.constant 0 : index
    %c0_49 = arith.constant 0 : index
    %71 = vector.load %arg10[%c0_48, %c0_49] : memref<1x128xf32, #tpu.memory_space<vmem>>, vector<1x128xf32>
    %c0_50 = arith.constant 0 : index
    %c0_51 = arith.constant 0 : index
    %72 = vector.load %arg16[%c0_50, %c0_51] : memref<64x32xf32, #tpu.memory_space<vmem>>, vector<64x32xf32>
    %73 = arith.truncf %72 : vector<64x32xf32> to vector<64x32xbf16>
    %cst_52 = arith.constant dense<0.000000e+00> : vector<64x128xf32>
    %74 = tpu.matmul %73, %66, %cst_52 {dimension_numbers = #tpu.dot_dimension_numbers<[1], [0], [0], [1], [0, 0, 1, 1], [], []>} : vector<64x32xbf16>, vector<32x128xbf16>, vector<64x128xf32> -> vector<64x128xf32>
    %75 = vector.broadcast %70 : vector<1x128xf32> to vector<64x128xf32>
    %76 = arith.addf %74, %75 : vector<64x128xf32>
    %c0_53 = arith.constant 0 : index
    %c0_54 = arith.constant 0 : index
    %77 = vector.load %arg17[%c0_53, %c0_54] : memref<64x128xf32, #tpu.memory_space<vmem>>, vector<64x128xf32>
    tpu.vector_store %arg17[%c0_53, %c0_54], %76 {strides = array<i32>} : memref<64x128xf32, #tpu.memory_space<vmem>>, vector<64x128xf32>,
    %c0_55 = arith.constant 0 : index
    %c0_56 = arith.constant 0 : index
    %c0_57 = arith.constant 0 : index
    %78 = vector.load %arg3[%c0_55, %c0_56, %c0_57] : memref<2x8x32xf32, #tpu.memory_space<vmem>>, vector<1x8x32xf32>
    %79 = vector.shape_cast %78 : vector<1x8x32xf32> to vector<8x32xf32>
    %c1_58 = arith.constant 1 : index
    %c0_59 = arith.constant 0 : index
    %c0_60 = arith.constant 0 : index
    %80 = vector.load %arg3[%c1_58, %c0_59, %c0_60] : memref<2x8x32xf32, #tpu.memory_space<vmem>>, vector<1x8x32xf32>
    %81 = vector.shape_cast %80 : vector<1x8x32xf32> to vector<8x32xf32>
    %c0_61 = arith.constant 0 : index
    %c0_62 = arith.constant 0 : index
    %c0_63 = arith.constant 0 : index
    %82 = vector.load %arg4[%c0_61, %c0_62, %c0_63] : memref<2x8x32xf32, #tpu.memory_space<vmem>>, vector<1x8x32xf32>
    %83 = vector.shape_cast %82 : vector<1x8x32xf32> to vector<8x32xf32>
    %c1_64 = arith.constant 1 : index
    %c0_65 = arith.constant 0 : index
    %c0_66 = arith.constant 0 : index
    %84 = vector.load %arg4[%c1_64, %c0_65, %c0_66] : memref<2x8x32xf32, #tpu.memory_space<vmem>>, vector<1x8x32xf32>
    %85 = vector.shape_cast %84 : vector<1x8x32xf32> to vector<8x32xf32>
    %c0_67 = arith.constant 0 : index
    %c0_68 = arith.constant 0 : index
    %86 = vector.load %arg17[%c0_67, %c0_68] : memref<64x128xf32, #tpu.memory_space<vmem>>, vector<8x128xf32>
    %87 = arith.truncf %79 : vector<8x32xf32> to vector<8x32xbf16>
    %cst_69 = arith.constant dense<0.000000e+00> : vector<8x128xf32>
    %88 = tpu.matmul %87, %68, %cst_69 {dimension_numbers = #tpu.dot_dimension_numbers<[1], [0], [0], [1], [0, 0, 1, 1], [], []>} : vector<8x32xbf16>, vector<32x128xbf16>, vector<8x128xf32> -> vector<8x128xf32>
    %89 = arith.addf %86, %88 : vector<8x128xf32>
    %90 = arith.negf %89 : vector<8x128xf32>
    %91 = math.exp %90 : vector<8x128xf32>
    %cst_70 = arith.constant 1.000000e+00 : f32
    %92 = vector.broadcast %cst_70 : f32 to vector<8x128xf32>
    %93 = arith.addf %92, %91 : vector<8x128xf32>
    %94 = arith.divf %92, %93 : vector<8x128xf32>
    %95 = math.tanh %89 : vector<8x128xf32>
    %96 = vector.extract_strided_slice %94 {offsets = [0, 0], sizes = [8, 32], strides = [1, 1]} : vector<8x128xf32> to vector<8x32xf32>
    %97 = vector.extract_strided_slice %94 {offsets = [0, 32], sizes = [8, 32], strides = [1, 1]} : vector<8x128xf32> to vector<8x32xf32>
    %98 = vector.extract_strided_slice %95 {offsets = [0, 64], sizes = [8, 32], strides = [1, 1]} : vector<8x128xf32> to vector<8x32xf32>
    %99 = vector.extract_strided_slice %94 {offsets = [0, 96], sizes = [8, 32], strides = [1, 1]} : vector<8x128xf32> to vector<8x32xf32>
    %100 = arith.mulf %97, %83 : vector<8x32xf32>
    %101 = arith.mulf %96, %98 : vector<8x32xf32>
    %102 = arith.addf %100, %101 : vector<8x32xf32>
    %103 = math.tanh %102 : vector<8x32xf32>
    %104 = arith.mulf %99, %103 : vector<8x32xf32>
    %105 = arith.truncf %104 : vector<8x32xf32> to vector<8x32xbf16>
    %cst_71 = arith.constant dense<0.000000e+00> : vector<8x128xf32>
    %106 = tpu.matmul %105, %67, %cst_71 {dimension_numbers = #tpu.dot_dimension_numbers<[1], [0], [0], [1], [0, 0, 1, 1], [], []>} : vector<8x32xbf16>, vector<32x128xbf16>, vector<8x128xf32> -> vector<8x128xf32>
    %107 = vector.broadcast %71 : vector<1x128xf32> to vector<8x128xf32>
    %108 = arith.addf %106, %107 : vector<8x128xf32>
    %109 = arith.truncf %81 : vector<8x32xf32> to vector<8x32xbf16>
    %cst_72 = arith.constant dense<0.000000e+00> : vector<8x128xf32>
    %110 = tpu.matmul %109, %69, %cst_72 {dimension_numbers = #tpu.dot_dimension_numbers<[1], [0], [0], [1], [0, 0, 1, 1], [], []>} : vector<8x32xbf16>, vector<32x128xbf16>, vector<8x128xf32> -> vector<8x128xf32>
    %111 = arith.addf %108, %110 : vector<8x128xf32>
    %112 = arith.negf %111 : vector<8x128xf32>
    %113 = math.exp %112 : vector<8x128xf32>
    %cst_73 = arith.constant 1.000000e+00 : f32
    %114 = vector.broadcast %cst_73 : f32 to vector<8x128xf32>
    %115 = arith.addf %114, %113 : vector<8x128xf32>
    %116 = arith.divf %114, %115 : vector<8x128xf32>
    %117 = math.tanh %111 : vector<8x128xf32>
    %118 = vector.extract_strided_slice %116 {offsets = [0, 0], sizes = [8, 32], strides = [1, 1]} : vector<8x128xf32> to vector<8x32xf32>
    %119 = vector.extract_strided_slice %116 {offsets = [0, 32], sizes = [8, 32], strides = [1, 1]} : vector<8x128xf32> to vector<8x32xf32>
    %120 = vector.extract_strided_slice %117 {offsets = [0, 64], sizes = [8, 32], strides = [1, 1]} : vector<8x128xf32> to vector<8x32xf32>
    %121 = vector.extract_strided_slice %116 {offsets = [0, 96], sizes = [8, 32], strides = [1, 1]} : vector<8x128xf32> to vector<8x32xf32>
    %122 = arith.mulf %119, %85 : vector<8x32xf32>
    %123 = arith.mulf %118, %120 : vector<8x32xf32>
    %124 = arith.addf %122, %123 : vector<8x32xf32>
    %125 = math.tanh %124 : vector<8x32xf32>
    %126 = arith.mulf %121, %125 : vector<8x32xf32>
    %c0_74 = arith.constant 0 : index
    %c0_75 = arith.constant 0 : index
    %127 = vector.load %arg18[%c0_74, %c0_75] : memref<64x32xf32, #tpu.memory_space<vmem>>, vector<8x32xf32>
    tpu.vector_store %arg18[%c0_74, %c0_75], %126 {strides = array<i32>} : memref<64x32xf32, #tpu.memory_space<vmem>>, vector<8x32xf32>,
    %c8_76 = arith.constant 8 : index
    %c0_77 = arith.constant 0 : index
    %128 = vector.load %arg17[%c8_76, %c0_77] : memref<64x128xf32, #tpu.memory_space<vmem>>, vector<8x128xf32>
    %129 = arith.truncf %104 : vector<8x32xf32> to vector<8x32xbf16>
    %cst_78 = arith.constant dense<0.000000e+00> : vector<8x128xf32>
    %130 = tpu.matmul %129, %68, %cst_78 {dimension_numbers = #tpu.dot_dimension_numbers<[1], [0], [0], [1], [0, 0, 1, 1], [], []>} : vector<8x32xbf16>, vector<32x128xbf16>, vector<8x128xf32> -> vector<8x128xf32>
    %131 = arith.addf %128, %130 : vector<8x128xf32>
    %132 = arith.negf %131 : vector<8x128xf32>
    %133 = math.exp %132 : vector<8x128xf32>
    %cst_79 = arith.constant 1.000000e+00 : f32
    %134 = vector.broadcast %cst_79 : f32 to vector<8x128xf32>
    %135 = arith.addf %134, %133 : vector<8x128xf32>
    %136 = arith.divf %134, %135 : vector<8x128xf32>
    %137 = math.tanh %131 : vector<8x128xf32>
    %138 = vector.extract_strided_slice %136 {offsets = [0, 0], sizes = [8, 32], strides = [1, 1]} : vector<8x128xf32> to vector<8x32xf32>
    %139 = vector.extract_strided_slice %136 {offsets = [0, 32], sizes = [8, 32], strides = [1, 1]} : vector<8x128xf32> to vector<8x32xf32>
    %140 = vector.extract_strided_slice %137 {offsets = [0, 64], sizes = [8, 32], strides = [1, 1]} : vector<8x128xf32> to vector<8x32xf32>
    %141 = vector.extract_strided_slice %136 {offsets = [0, 96], sizes = [8, 32], strides = [1, 1]} : vector<8x128xf32> to vector<8x32xf32>
    %142 = arith.mulf %139, %102 : vector<8x32xf32>
    %143 = arith.mulf %138, %140 : vector<8x32xf32>
    %144 = arith.addf %142, %143 : vector<8x32xf32>
    %145 = math.tanh %144 : vector<8x32xf32>
    %146 = arith.mulf %141, %145 : vector<8x32xf32>
    %147 = arith.truncf %146 : vector<8x32xf32> to vector<8x32xbf16>
    %cst_80 = arith.constant dense<0.000000e+00> : vector<8x128xf32>
    %148 = tpu.matmul %147, %67, %cst_80 {dimension_numbers = #tpu.dot_dimension_numbers<[1], [0], [0], [1], [0, 0, 1, 1], [], []>} : vector<8x32xbf16>, vector<32x128xbf16>, vector<8x128xf32> -> vector<8x128xf32>
    %149 = vector.broadcast %71 : vector<1x128xf32> to vector<8x128xf32>
    %150 = arith.addf %148, %149 : vector<8x128xf32>
    %151 = arith.truncf %126 : vector<8x32xf32> to vector<8x32xbf16>
    %cst_81 = arith.constant dense<0.000000e+00> : vector<8x128xf32>
    %152 = tpu.matmul %151, %69, %cst_81 {dimension_numbers = #tpu.dot_dimension_numbers<[1], [0], [0], [1], [0, 0, 1, 1], [], []>} : vector<8x32xbf16>, vector<32x128xbf16>, vector<8x128xf32> -> vector<8x128xf32>
    %153 = arith.addf %150, %152 : vector<8x128xf32>
    %154 = arith.negf %153 : vector<8x128xf32>
    %155 = math.exp %154 : vector<8x128xf32>
    %cst_82 = arith.constant 1.000000e+00 : f32
    %156 = vector.broadcast %cst_82 : f32 to vector<8x128xf32>
    %157 = arith.addf %156, %155 : vector<8x128xf32>
    %158 = arith.divf %156, %157 : vector<8x128xf32>
    %159 = math.tanh %153 : vector<8x128xf32>
    %160 = vector.extract_strided_slice %158 {offsets = [0, 0], sizes = [8, 32], strides = [1, 1]} : vector<8x128xf32> to vector<8x32xf32>
    %161 = vector.extract_strided_slice %158 {offsets = [0, 32], sizes = [8, 32], strides = [1, 1]} : vector<8x128xf32> to vector<8x32xf32>
    %162 = vector.extract_strided_slice %159 {offsets = [0, 64], sizes = [8, 32], strides = [1, 1]} : vector<8x128xf32> to vector<8x32xf32>
    %163 = vector.extract_strided_slice %158 {offsets = [0, 96], sizes = [8, 32], strides = [1, 1]} : vector<8x128xf32> to vector<8x32xf32>
    %164 = arith.mulf %161, %124 : vector<8x32xf32>
    %165 = arith.mulf %160, %162 : vector<8x32xf32>
    %166 = arith.addf %164, %165 : vector<8x32xf32>
    %167 = math.tanh %166 : vector<8x32xf32>
    %168 = arith.mulf %163, %167 : vector<8x32xf32>
    %c8_83 = arith.constant 8 : index
    %c0_84 = arith.constant 0 : index
    %169 = vector.load %arg18[%c8_83, %c0_84] : memref<64x32xf32, #tpu.memory_space<vmem>>, vector<8x32xf32>
    tpu.vector_store %arg18[%c8_83, %c0_84], %168 {strides = array<i32>} : memref<64x32xf32, #tpu.memory_space<vmem>>, vector<8x32xf32>,
    %c16_85 = arith.constant 16 : index
    %c0_86 = arith.constant 0 : index
    %170 = vector.load %arg17[%c16_85, %c0_86] : memref<64x128xf32, #tpu.memory_space<vmem>>, vector<8x128xf32>
    %171 = arith.truncf %146 : vector<8x32xf32> to vector<8x32xbf16>
    %cst_87 = arith.constant dense<0.000000e+00> : vector<8x128xf32>
    %172 = tpu.matmul %171, %68, %cst_87 {dimension_numbers = #tpu.dot_dimension_numbers<[1], [0], [0], [1], [0, 0, 1, 1], [], []>} : vector<8x32xbf16>, vector<32x128xbf16>, vector<8x128xf32> -> vector<8x128xf32>
    %173 = arith.addf %170, %172 : vector<8x128xf32>
    %174 = arith.negf %173 : vector<8x128xf32>
    %175 = math.exp %174 : vector<8x128xf32>
    %cst_88 = arith.constant 1.000000e+00 : f32
    %176 = vector.broadcast %cst_88 : f32 to vector<8x128xf32>
    %177 = arith.addf %176, %175 : vector<8x128xf32>
    %178 = arith.divf %176, %177 : vector<8x128xf32>
    %179 = math.tanh %173 : vector<8x128xf32>
    %180 = vector.extract_strided_slice %178 {offsets = [0, 0], sizes = [8, 32], strides = [1, 1]} : vector<8x128xf32> to vector<8x32xf32>
    %181 = vector.extract_strided_slice %178 {offsets = [0, 32], sizes = [8, 32], strides = [1, 1]} : vector<8x128xf32> to vector<8x32xf32>
    %182 = vector.extract_strided_slice %179 {offsets = [0, 64], sizes = [8, 32], strides = [1, 1]} : vector<8x128xf32> to vector<8x32xf32>
    %183 = vector.extract_strided_slice %178 {offsets = [0, 96], sizes = [8, 32], strides = [1, 1]} : vector<8x128xf32> to vector<8x32xf32>
    %184 = arith.mulf %181, %144 : vector<8x32xf32>
    %185 = arith.mulf %180, %182 : vector<8x32xf32>
    %186 = arith.addf %184, %185 : vector<8x32xf32>
    %187 = math.tanh %186 : vector<8x32xf32>
    %188 = arith.mulf %183, %187 : vector<8x32xf32>
    %189 = arith.truncf %188 : vector<8x32xf32> to vector<8x32xbf16>
    %cst_89 = arith.constant dense<0.000000e+00> : vector<8x128xf32>
    %190 = tpu.matmul %189, %67, %cst_89 {dimension_numbers = #tpu.dot_dimension_numbers<[1], [0], [0], [1], [0, 0, 1, 1], [], []>} : vector<8x32xbf16>, vector<32x128xbf16>, vector<8x128xf32> -> vector<8x128xf32>
    %191 = vector.broadcast %71 : vector<1x128xf32> to vector<8x128xf32>
    %192 = arith.addf %190, %191 : vector<8x128xf32>
    %193 = arith.truncf %168 : vector<8x32xf32> to vector<8x32xbf16>
    %cst_90 = arith.constant dense<0.000000e+00> : vector<8x128xf32>
    %194 = tpu.matmul %193, %69, %cst_90 {dimension_numbers = #tpu.dot_dimension_numbers<[1], [0], [0], [1], [0, 0, 1, 1], [], []>} : vector<8x32xbf16>, vector<32x128xbf16>, vector<8x128xf32> -> vector<8x128xf32>
    %195 = arith.addf %192, %194 : vector<8x128xf32>
    %196 = arith.negf %195 : vector<8x128xf32>
    %197 = math.exp %196 : vector<8x128xf32>
    %cst_91 = arith.constant 1.000000e+00 : f32
    %198 = vector.broadcast %cst_91 : f32 to vector<8x128xf32>
    %199 = arith.addf %198, %197 : vector<8x128xf32>
    %200 = arith.divf %198, %199 : vector<8x128xf32>
    %201 = math.tanh %195 : vector<8x128xf32>
    %202 = vector.extract_strided_slice %200 {offsets = [0, 0], sizes = [8, 32], strides = [1, 1]} : vector<8x128xf32> to vector<8x32xf32>
    %203 = vector.extract_strided_slice %200 {offsets = [0, 32], sizes = [8, 32], strides = [1, 1]} : vector<8x128xf32> to vector<8x32xf32>
    %204 = vector.extract_strided_slice %201 {offsets = [0, 64], sizes = [8, 32], strides = [1, 1]} : vector<8x128xf32> to vector<8x32xf32>
    %205 = vector.extract_strided_slice %200 {offsets = [0, 96], sizes = [8, 32], strides = [1, 1]} : vector<8x128xf32> to vector<8x32xf32>
    %206 = arith.mulf %203, %166 : vector<8x32xf32>
    %207 = arith.mulf %202, %204 : vector<8x32xf32>
    %208 = arith.addf %206, %207 : vector<8x32xf32>
    %209 = math.tanh %208 : vector<8x32xf32>
    %210 = arith.mulf %205, %209 : vector<8x32xf32>
    %c16_92 = arith.constant 16 : index
    %c0_93 = arith.constant 0 : index
    %211 = vector.load %arg18[%c16_92, %c0_93] : memref<64x32xf32, #tpu.memory_space<vmem>>, vector<8x32xf32>
    tpu.vector_store %arg18[%c16_92, %c0_93], %210 {strides = array<i32>} : memref<64x32xf32, #tpu.memory_space<vmem>>, vector<8x32xf32>,
    %c24_94 = arith.constant 24 : index
    %c0_95 = arith.constant 0 : index
    %212 = vector.load %arg17[%c24_94, %c0_95] : memref<64x128xf32, #tpu.memory_space<vmem>>, vector<8x128xf32>
    %213 = arith.truncf %188 : vector<8x32xf32> to vector<8x32xbf16>
    %cst_96 = arith.constant dense<0.000000e+00> : vector<8x128xf32>
    %214 = tpu.matmul %213, %68, %cst_96 {dimension_numbers = #tpu.dot_dimension_numbers<[1], [0], [0], [1], [0, 0, 1, 1], [], []>} : vector<8x32xbf16>, vector<32x128xbf16>, vector<8x128xf32> -> vector<8x128xf32>
    %215 = arith.addf %212, %214 : vector<8x128xf32>
    %216 = arith.negf %215 : vector<8x128xf32>
    %217 = math.exp %216 : vector<8x128xf32>
    %cst_97 = arith.constant 1.000000e+00 : f32
    %218 = vector.broadcast %cst_97 : f32 to vector<8x128xf32>
    %219 = arith.addf %218, %217 : vector<8x128xf32>
    %220 = arith.divf %218, %219 : vector<8x128xf32>
    %221 = math.tanh %215 : vector<8x128xf32>
    %222 = vector.extract_strided_slice %220 {offsets = [0, 0], sizes = [8, 32], strides = [1, 1]} : vector<8x128xf32> to vector<8x32xf32>
    %223 = vector.extract_strided_slice %220 {offsets = [0, 32], sizes = [8, 32], strides = [1, 1]} : vector<8x128xf32> to vector<8x32xf32>
    %224 = vector.extract_strided_slice %221 {offsets = [0, 64], sizes = [8, 32], strides = [1, 1]} : vector<8x128xf32> to vector<8x32xf32>
    %225 = vector.extract_strided_slice %220 {offsets = [0, 96], sizes = [8, 32], strides = [1, 1]} : vector<8x128xf32> to vector<8x32xf32>
    %226 = arith.mulf %223, %186 : vector<8x32xf32>
    %227 = arith.mulf %222, %224 : vector<8x32xf32>
    %228 = arith.addf %226, %227 : vector<8x32xf32>
    %229 = math.tanh %228 : vector<8x32xf32>
    %230 = arith.mulf %225, %229 : vector<8x32xf32>
    %231 = arith.truncf %230 : vector<8x32xf32> to vector<8x32xbf16>
    %cst_98 = arith.constant dense<0.000000e+00> : vector<8x128xf32>
    %232 = tpu.matmul %231, %67, %cst_98 {dimension_numbers = #tpu.dot_dimension_numbers<[1], [0], [0], [1], [0, 0, 1, 1], [], []>} : vector<8x32xbf16>, vector<32x128xbf16>, vector<8x128xf32> -> vector<8x128xf32>
    %233 = vector.broadcast %71 : vector<1x128xf32> to vector<8x128xf32>
    %234 = arith.addf %232, %233 : vector<8x128xf32>
    %235 = arith.truncf %210 : vector<8x32xf32> to vector<8x32xbf16>
    %cst_99 = arith.constant dense<0.000000e+00> : vector<8x128xf32>
    %236 = tpu.matmul %235, %69, %cst_99 {dimension_numbers = #tpu.dot_dimension_numbers<[1], [0], [0], [1], [0, 0, 1, 1], [], []>} : vector<8x32xbf16>, vector<32x128xbf16>, vector<8x128xf32> -> vector<8x128xf32>
    %237 = arith.addf %234, %236 : vector<8x128xf32>
    %238 = arith.negf %237 : vector<8x128xf32>
    %239 = math.exp %238 : vector<8x128xf32>
    %cst_100 = arith.constant 1.000000e+00 : f32
    %240 = vector.broadcast %cst_100 : f32 to vector<8x128xf32>
    %241 = arith.addf %240, %239 : vector<8x128xf32>
    %242 = arith.divf %240, %241 : vector<8x128xf32>
    %243 = math.tanh %237 : vector<8x128xf32>
    %244 = vector.extract_strided_slice %242 {offsets = [0, 0], sizes = [8, 32], strides = [1, 1]} : vector<8x128xf32> to vector<8x32xf32>
    %245 = vector.extract_strided_slice %242 {offsets = [0, 32], sizes = [8, 32], strides = [1, 1]} : vector<8x128xf32> to vector<8x32xf32>
    %246 = vector.extract_strided_slice %243 {offsets = [0, 64], sizes = [8, 32], strides = [1, 1]} : vector<8x128xf32> to vector<8x32xf32>
    %247 = vector.extract_strided_slice %242 {offsets = [0, 96], sizes = [8, 32], strides = [1, 1]} : vector<8x128xf32> to vector<8x32xf32>
    %248 = arith.mulf %245, %208 : vector<8x32xf32>
    %249 = arith.mulf %244, %246 : vector<8x32xf32>
    %250 = arith.addf %248, %249 : vector<8x32xf32>
    %251 = math.tanh %250 : vector<8x32xf32>
    %252 = arith.mulf %247, %251 : vector<8x32xf32>
    %c24_101 = arith.constant 24 : index
    %c0_102 = arith.constant 0 : index
    %253 = vector.load %arg18[%c24_101, %c0_102] : memref<64x32xf32, #tpu.memory_space<vmem>>, vector<8x32xf32>
    tpu.vector_store %arg18[%c24_101, %c0_102], %252 {strides = array<i32>} : memref<64x32xf32, #tpu.memory_space<vmem>>, vector<8x32xf32>,
    %c32_103 = arith.constant 32 : index
    %c0_104 = arith.constant 0 : index
    %254 = vector.load %arg17[%c32_103, %c0_104] : memref<64x128xf32, #tpu.memory_space<vmem>>, vector<8x128xf32>
    %255 = arith.truncf %230 : vector<8x32xf32> to vector<8x32xbf16>
    %cst_105 = arith.constant dense<0.000000e+00> : vector<8x128xf32>
    %256 = tpu.matmul %255, %68, %cst_105 {dimension_numbers = #tpu.dot_dimension_numbers<[1], [0], [0], [1], [0, 0, 1, 1], [], []>} : vector<8x32xbf16>, vector<32x128xbf16>, vector<8x128xf32> -> vector<8x128xf32>
    %257 = arith.addf %254, %256 : vector<8x128xf32>
    %258 = arith.negf %257 : vector<8x128xf32>
    %259 = math.exp %258 : vector<8x128xf32>
    %cst_106 = arith.constant 1.000000e+00 : f32
    %260 = vector.broadcast %cst_106 : f32 to vector<8x128xf32>
    %261 = arith.addf %260, %259 : vector<8x128xf32>
    %262 = arith.divf %260, %261 : vector<8x128xf32>
    %263 = math.tanh %257 : vector<8x128xf32>
    %264 = vector.extract_strided_slice %262 {offsets = [0, 0], sizes = [8, 32], strides = [1, 1]} : vector<8x128xf32> to vector<8x32xf32>
    %265 = vector.extract_strided_slice %262 {offsets = [0, 32], sizes = [8, 32], strides = [1, 1]} : vector<8x128xf32> to vector<8x32xf32>
    %266 = vector.extract_strided_slice %263 {offsets = [0, 64], sizes = [8, 32], strides = [1, 1]} : vector<8x128xf32> to vector<8x32xf32>
    %267 = vector.extract_strided_slice %262 {offsets = [0, 96], sizes = [8, 32], strides = [1, 1]} : vector<8x128xf32> to vector<8x32xf32>
    %268 = arith.mulf %265, %228 : vector<8x32xf32>
    %269 = arith.mulf %264, %266 : vector<8x32xf32>
    %270 = arith.addf %268, %269 : vector<8x32xf32>
    %271 = math.tanh %270 : vector<8x32xf32>
    %272 = arith.mulf %267, %271 : vector<8x32xf32>
    %273 = arith.truncf %272 : vector<8x32xf32> to vector<8x32xbf16>
    %cst_107 = arith.constant dense<0.000000e+00> : vector<8x128xf32>
    %274 = tpu.matmul %273, %67, %cst_107 {dimension_numbers = #tpu.dot_dimension_numbers<[1], [0], [0], [1], [0, 0, 1, 1], [], []>} : vector<8x32xbf16>, vector<32x128xbf16>, vector<8x128xf32> -> vector<8x128xf32>
    %275 = vector.broadcast %71 : vector<1x128xf32> to vector<8x128xf32>
    %276 = arith.addf %274, %275 : vector<8x128xf32>
    %277 = arith.truncf %252 : vector<8x32xf32> to vector<8x32xbf16>
    %cst_108 = arith.constant dense<0.000000e+00> : vector<8x128xf32>
    %278 = tpu.matmul %277, %69, %cst_108 {dimension_numbers = #tpu.dot_dimension_numbers<[1], [0], [0], [1], [0, 0, 1, 1], [], []>} : vector<8x32xbf16>, vector<32x128xbf16>, vector<8x128xf32> -> vector<8x128xf32>
    %279 = arith.addf %276, %278 : vector<8x128xf32>
    %280 = arith.negf %279 : vector<8x128xf32>
    %281 = math.exp %280 : vector<8x128xf32>
    %cst_109 = arith.constant 1.000000e+00 : f32
    %282 = vector.broadcast %cst_109 : f32 to vector<8x128xf32>
    %283 = arith.addf %282, %281 : vector<8x128xf32>
    %284 = arith.divf %282, %283 : vector<8x128xf32>
    %285 = math.tanh %279 : vector<8x128xf32>
    %286 = vector.extract_strided_slice %284 {offsets = [0, 0], sizes = [8, 32], strides = [1, 1]} : vector<8x128xf32> to vector<8x32xf32>
    %287 = vector.extract_strided_slice %284 {offsets = [0, 32], sizes = [8, 32], strides = [1, 1]} : vector<8x128xf32> to vector<8x32xf32>
    %288 = vector.extract_strided_slice %285 {offsets = [0, 64], sizes = [8, 32], strides = [1, 1]} : vector<8x128xf32> to vector<8x32xf32>
    %289 = vector.extract_strided_slice %284 {offsets = [0, 96], sizes = [8, 32], strides = [1, 1]} : vector<8x128xf32> to vector<8x32xf32>
    %290 = arith.mulf %287, %250 : vector<8x32xf32>
    %291 = arith.mulf %286, %288 : vector<8x32xf32>
    %292 = arith.addf %290, %291 : vector<8x32xf32>
    %293 = math.tanh %292 : vector<8x32xf32>
    %294 = arith.mulf %289, %293 : vector<8x32xf32>
    %c32_110 = arith.constant 32 : index
    %c0_111 = arith.constant 0 : index
    %295 = vector.load %arg18[%c32_110, %c0_111] : memref<64x32xf32, #tpu.memory_space<vmem>>, vector<8x32xf32>
    tpu.vector_store %arg18[%c32_110, %c0_111], %294 {strides = array<i32>} : memref<64x32xf32, #tpu.memory_space<vmem>>, vector<8x32xf32>,
    %c40_112 = arith.constant 40 : index
    %c0_113 = arith.constant 0 : index
    %296 = vector.load %arg17[%c40_112, %c0_113] : memref<64x128xf32, #tpu.memory_space<vmem>>, vector<8x128xf32>
    %297 = arith.truncf %272 : vector<8x32xf32> to vector<8x32xbf16>
    %cst_114 = arith.constant dense<0.000000e+00> : vector<8x128xf32>
    %298 = tpu.matmul %297, %68, %cst_114 {dimension_numbers = #tpu.dot_dimension_numbers<[1], [0], [0], [1], [0, 0, 1, 1], [], []>} : vector<8x32xbf16>, vector<32x128xbf16>, vector<8x128xf32> -> vector<8x128xf32>
    %299 = arith.addf %296, %298 : vector<8x128xf32>
    %300 = arith.negf %299 : vector<8x128xf32>
    %301 = math.exp %300 : vector<8x128xf32>
    %cst_115 = arith.constant 1.000000e+00 : f32
    %302 = vector.broadcast %cst_115 : f32 to vector<8x128xf32>
    %303 = arith.addf %302, %301 : vector<8x128xf32>
    %304 = arith.divf %302, %303 : vector<8x128xf32>
    %305 = math.tanh %299 : vector<8x128xf32>
    %306 = vector.extract_strided_slice %304 {offsets = [0, 0], sizes = [8, 32], strides = [1, 1]} : vector<8x128xf32> to vector<8x32xf32>
    %307 = vector.extract_strided_slice %304 {offsets = [0, 32], sizes = [8, 32], strides = [1, 1]} : vector<8x128xf32> to vector<8x32xf32>
    %308 = vector.extract_strided_slice %305 {offsets = [0, 64], sizes = [8, 32], strides = [1, 1]} : vector<8x128xf32> to vector<8x32xf32>
    %309 = vector.extract_strided_slice %304 {offsets = [0, 96], sizes = [8, 32], strides = [1, 1]} : vector<8x128xf32> to vector<8x32xf32>
    %310 = arith.mulf %307, %270 : vector<8x32xf32>
    %311 = arith.mulf %306, %308 : vector<8x32xf32>
    %312 = arith.addf %310, %311 : vector<8x32xf32>
    %313 = math.tanh %312 : vector<8x32xf32>
    %314 = arith.mulf %309, %313 : vector<8x32xf32>
    %315 = arith.truncf %314 : vector<8x32xf32> to vector<8x32xbf16>
    %cst_116 = arith.constant dense<0.000000e+00> : vector<8x128xf32>
    %316 = tpu.matmul %315, %67, %cst_116 {dimension_numbers = #tpu.dot_dimension_numbers<[1], [0], [0], [1], [0, 0, 1, 1], [], []>} : vector<8x32xbf16>, vector<32x128xbf16>, vector<8x128xf32> -> vector<8x128xf32>
    %317 = vector.broadcast %71 : vector<1x128xf32> to vector<8x128xf32>
    %318 = arith.addf %316, %317 : vector<8x128xf32>
    %319 = arith.truncf %294 : vector<8x32xf32> to vector<8x32xbf16>
    %cst_117 = arith.constant dense<0.000000e+00> : vector<8x128xf32>
    %320 = tpu.matmul %319, %69, %cst_117 {dimension_numbers = #tpu.dot_dimension_numbers<[1], [0], [0], [1], [0, 0, 1, 1], [], []>} : vector<8x32xbf16>, vector<32x128xbf16>, vector<8x128xf32> -> vector<8x128xf32>
    %321 = arith.addf %318, %320 : vector<8x128xf32>
    %322 = arith.negf %321 : vector<8x128xf32>
    %323 = math.exp %322 : vector<8x128xf32>
    %cst_118 = arith.constant 1.000000e+00 : f32
    %324 = vector.broadcast %cst_118 : f32 to vector<8x128xf32>
    %325 = arith.addf %324, %323 : vector<8x128xf32>
    %326 = arith.divf %324, %325 : vector<8x128xf32>
    %327 = math.tanh %321 : vector<8x128xf32>
    %328 = vector.extract_strided_slice %326 {offsets = [0, 0], sizes = [8, 32], strides = [1, 1]} : vector<8x128xf32> to vector<8x32xf32>
    %329 = vector.extract_strided_slice %326 {offsets = [0, 32], sizes = [8, 32], strides = [1, 1]} : vector<8x128xf32> to vector<8x32xf32>
    %330 = vector.extract_strided_slice %327 {offsets = [0, 64], sizes = [8, 32], strides = [1, 1]} : vector<8x128xf32> to vector<8x32xf32>
    %331 = vector.extract_strided_slice %326 {offsets = [0, 96], sizes = [8, 32], strides = [1, 1]} : vector<8x128xf32> to vector<8x32xf32>
    %332 = arith.mulf %329, %292 : vector<8x32xf32>
    %333 = arith.mulf %328, %330 : vector<8x32xf32>
    %334 = arith.addf %332, %333 : vector<8x32xf32>
    %335 = math.tanh %334 : vector<8x32xf32>
    %336 = arith.mulf %331, %335 : vector<8x32xf32>
    %c40_119 = arith.constant 40 : index
    %c0_120 = arith.constant 0 : index
    %337 = vector.load %arg18[%c40_119, %c0_120] : memref<64x32xf32, #tpu.memory_space<vmem>>, vector<8x32xf32>
    tpu.vector_store %arg18[%c40_119, %c0_120], %336 {strides = array<i32>} : memref<64x32xf32, #tpu.memory_space<vmem>>, vector<8x32xf32>,
    %c48_121 = arith.constant 48 : index
    %c0_122 = arith.constant 0 : index
    %338 = vector.load %arg17[%c48_121, %c0_122] : memref<64x128xf32, #tpu.memory_space<vmem>>, vector<8x128xf32>
    %339 = arith.truncf %314 : vector<8x32xf32> to vector<8x32xbf16>
    %cst_123 = arith.constant dense<0.000000e+00> : vector<8x128xf32>
    %340 = tpu.matmul %339, %68, %cst_123 {dimension_numbers = #tpu.dot_dimension_numbers<[1], [0], [0], [1], [0, 0, 1, 1], [], []>} : vector<8x32xbf16>, vector<32x128xbf16>, vector<8x128xf32> -> vector<8x128xf32>
    %341 = arith.addf %338, %340 : vector<8x128xf32>
    %342 = arith.negf %341 : vector<8x128xf32>
    %343 = math.exp %342 : vector<8x128xf32>
    %cst_124 = arith.constant 1.000000e+00 : f32
    %344 = vector.broadcast %cst_124 : f32 to vector<8x128xf32>
    %345 = arith.addf %344, %343 : vector<8x128xf32>
    %346 = arith.divf %344, %345 : vector<8x128xf32>
    %347 = math.tanh %341 : vector<8x128xf32>
    %348 = vector.extract_strided_slice %346 {offsets = [0, 0], sizes = [8, 32], strides = [1, 1]} : vector<8x128xf32> to vector<8x32xf32>
    %349 = vector.extract_strided_slice %346 {offsets = [0, 32], sizes = [8, 32], strides = [1, 1]} : vector<8x128xf32> to vector<8x32xf32>
    %350 = vector.extract_strided_slice %347 {offsets = [0, 64], sizes = [8, 32], strides = [1, 1]} : vector<8x128xf32> to vector<8x32xf32>
    %351 = vector.extract_strided_slice %346 {offsets = [0, 96], sizes = [8, 32], strides = [1, 1]} : vector<8x128xf32> to vector<8x32xf32>
    %352 = arith.mulf %349, %312 : vector<8x32xf32>
    %353 = arith.mulf %348, %350 : vector<8x32xf32>
    %354 = arith.addf %352, %353 : vector<8x32xf32>
    %355 = math.tanh %354 : vector<8x32xf32>
    %356 = arith.mulf %351, %355 : vector<8x32xf32>
    %357 = arith.truncf %356 : vector<8x32xf32> to vector<8x32xbf16>
    %cst_125 = arith.constant dense<0.000000e+00> : vector<8x128xf32>
    %358 = tpu.matmul %357, %67, %cst_125 {dimension_numbers = #tpu.dot_dimension_numbers<[1], [0], [0], [1], [0, 0, 1, 1], [], []>} : vector<8x32xbf16>, vector<32x128xbf16>, vector<8x128xf32> -> vector<8x128xf32>
    %359 = vector.broadcast %71 : vector<1x128xf32> to vector<8x128xf32>
    %360 = arith.addf %358, %359 : vector<8x128xf32>
    %361 = arith.truncf %336 : vector<8x32xf32> to vector<8x32xbf16>
    %cst_126 = arith.constant dense<0.000000e+00> : vector<8x128xf32>
    %362 = tpu.matmul %361, %69, %cst_126 {dimension_numbers = #tpu.dot_dimension_numbers<[1], [0], [0], [1], [0, 0, 1, 1], [], []>} : vector<8x32xbf16>, vector<32x128xbf16>, vector<8x128xf32> -> vector<8x128xf32>
    %363 = arith.addf %360, %362 : vector<8x128xf32>
    %364 = arith.negf %363 : vector<8x128xf32>
    %365 = math.exp %364 : vector<8x128xf32>
    %cst_127 = arith.constant 1.000000e+00 : f32
    %366 = vector.broadcast %cst_127 : f32 to vector<8x128xf32>
    %367 = arith.addf %366, %365 : vector<8x128xf32>
    %368 = arith.divf %366, %367 : vector<8x128xf32>
    %369 = math.tanh %363 : vector<8x128xf32>
    %370 = vector.extract_strided_slice %368 {offsets = [0, 0], sizes = [8, 32], strides = [1, 1]} : vector<8x128xf32> to vector<8x32xf32>
    %371 = vector.extract_strided_slice %368 {offsets = [0, 32], sizes = [8, 32], strides = [1, 1]} : vector<8x128xf32> to vector<8x32xf32>
    %372 = vector.extract_strided_slice %369 {offsets = [0, 64], sizes = [8, 32], strides = [1, 1]} : vector<8x128xf32> to vector<8x32xf32>
    %373 = vector.extract_strided_slice %368 {offsets = [0, 96], sizes = [8, 32], strides = [1, 1]} : vector<8x128xf32> to vector<8x32xf32>
    %374 = arith.mulf %371, %334 : vector<8x32xf32>
    %375 = arith.mulf %370, %372 : vector<8x32xf32>
    %376 = arith.addf %374, %375 : vector<8x32xf32>
    %377 = math.tanh %376 : vector<8x32xf32>
    %378 = arith.mulf %373, %377 : vector<8x32xf32>
    %c48_128 = arith.constant 48 : index
    %c0_129 = arith.constant 0 : index
    %379 = vector.load %arg18[%c48_128, %c0_129] : memref<64x32xf32, #tpu.memory_space<vmem>>, vector<8x32xf32>
    tpu.vector_store %arg18[%c48_128, %c0_129], %378 {strides = array<i32>} : memref<64x32xf32, #tpu.memory_space<vmem>>, vector<8x32xf32>,
    %c56_130 = arith.constant 56 : index
    %c0_131 = arith.constant 0 : index
    %380 = vector.load %arg17[%c56_130, %c0_131] : memref<64x128xf32, #tpu.memory_space<vmem>>, vector<8x128xf32>
    %381 = arith.truncf %356 : vector<8x32xf32> to vector<8x32xbf16>
    %cst_132 = arith.constant dense<0.000000e+00> : vector<8x128xf32>
    %382 = tpu.matmul %381, %68, %cst_132 {dimension_numbers = #tpu.dot_dimension_numbers<[1], [0], [0], [1], [0, 0, 1, 1], [], []>} : vector<8x32xbf16>, vector<32x128xbf16>, vector<8x128xf32> -> vector<8x128xf32>
    %383 = arith.addf %380, %382 : vector<8x128xf32>
    %384 = arith.negf %383 : vector<8x128xf32>
    %385 = math.exp %384 : vector<8x128xf32>
    %cst_133 = arith.constant 1.000000e+00 : f32
    %386 = vector.broadcast %cst_133 : f32 to vector<8x128xf32>
    %387 = arith.addf %386, %385 : vector<8x128xf32>
    %388 = arith.divf %386, %387 : vector<8x128xf32>
    %389 = math.tanh %383 : vector<8x128xf32>
    %390 = vector.extract_strided_slice %388 {offsets = [0, 0], sizes = [8, 32], strides = [1, 1]} : vector<8x128xf32> to vector<8x32xf32>
    %391 = vector.extract_strided_slice %388 {offsets = [0, 32], sizes = [8, 32], strides = [1, 1]} : vector<8x128xf32> to vector<8x32xf32>
    %392 = vector.extract_strided_slice %389 {offsets = [0, 64], sizes = [8, 32], strides = [1, 1]} : vector<8x128xf32> to vector<8x32xf32>
    %393 = vector.extract_strided_slice %388 {offsets = [0, 96], sizes = [8, 32], strides = [1, 1]} : vector<8x128xf32> to vector<8x32xf32>
    %394 = arith.mulf %391, %354 : vector<8x32xf32>
    %395 = arith.mulf %390, %392 : vector<8x32xf32>
    %396 = arith.addf %394, %395 : vector<8x32xf32>
    %397 = math.tanh %396 : vector<8x32xf32>
    %398 = arith.mulf %393, %397 : vector<8x32xf32>
    %399 = arith.truncf %398 : vector<8x32xf32> to vector<8x32xbf16>
    %cst_134 = arith.constant dense<0.000000e+00> : vector<8x128xf32>
    %400 = tpu.matmul %399, %67, %cst_134 {dimension_numbers = #tpu.dot_dimension_numbers<[1], [0], [0], [1], [0, 0, 1, 1], [], []>} : vector<8x32xbf16>, vector<32x128xbf16>, vector<8x128xf32> -> vector<8x128xf32>
    %401 = vector.broadcast %71 : vector<1x128xf32> to vector<8x128xf32>
    %402 = arith.addf %400, %401 : vector<8x128xf32>
    %403 = arith.truncf %378 : vector<8x32xf32> to vector<8x32xbf16>
    %cst_135 = arith.constant dense<0.000000e+00> : vector<8x128xf32>
    %404 = tpu.matmul %403, %69, %cst_135 {dimension_numbers = #tpu.dot_dimension_numbers<[1], [0], [0], [1], [0, 0, 1, 1], [], []>} : vector<8x32xbf16>, vector<32x128xbf16>, vector<8x128xf32> -> vector<8x128xf32>
    %405 = arith.addf %402, %404 : vector<8x128xf32>
    %406 = arith.negf %405 : vector<8x128xf32>
    %407 = math.exp %406 : vector<8x128xf32>
    %cst_136 = arith.constant 1.000000e+00 : f32
    %408 = vector.broadcast %cst_136 : f32 to vector<8x128xf32>
    %409 = arith.addf %408, %407 : vector<8x128xf32>
    %410 = arith.divf %408, %409 : vector<8x128xf32>
    %411 = math.tanh %405 : vector<8x128xf32>
    %412 = vector.extract_strided_slice %410 {offsets = [0, 0], sizes = [8, 32], strides = [1, 1]} : vector<8x128xf32> to vector<8x32xf32>
    %413 = vector.extract_strided_slice %410 {offsets = [0, 32], sizes = [8, 32], strides = [1, 1]} : vector<8x128xf32> to vector<8x32xf32>
    %414 = vector.extract_strided_slice %411 {offsets = [0, 64], sizes = [8, 32], strides = [1, 1]} : vector<8x128xf32> to vector<8x32xf32>
    %415 = vector.extract_strided_slice %410 {offsets = [0, 96], sizes = [8, 32], strides = [1, 1]} : vector<8x128xf32> to vector<8x32xf32>
    %416 = arith.mulf %413, %376 : vector<8x32xf32>
    %417 = arith.mulf %412, %414 : vector<8x32xf32>
    %418 = arith.addf %416, %417 : vector<8x32xf32>
    %419 = math.tanh %418 : vector<8x32xf32>
    %420 = arith.mulf %415, %419 : vector<8x32xf32>
    %c56_137 = arith.constant 56 : index
    %c0_138 = arith.constant 0 : index
    %421 = vector.load %arg18[%c56_137, %c0_138] : memref<64x32xf32, #tpu.memory_space<vmem>>, vector<8x32xf32>
    tpu.vector_store %arg18[%c56_137, %c0_138], %420 {strides = array<i32>} : memref<64x32xf32, #tpu.memory_space<vmem>>, vector<8x32xf32>,
    %c0_139 = arith.constant 0 : index
    %c0_140 = arith.constant 0 : index
    %c0_141 = arith.constant 0 : index
    %422 = vector.load %arg14[%c0_139, %c0_140, %c0_141] : memref<2x8x32xf32, #tpu.memory_space<vmem>>, vector<1x8x32xf32>
    %423 = vector.shape_cast %422 : vector<1x8x32xf32> to vector<8x32xf32>
    %424 = vector.shape_cast %398 : vector<8x32xf32> to vector<1x8x32xf32>
    tpu.vector_store %arg14[%c0_139, %c0_140, %c0_141], %424 {strides = array<i32>} : memref<2x8x32xf32, #tpu.memory_space<vmem>>, vector<1x8x32xf32>,
    %c0_142 = arith.constant 0 : index
    %c0_143 = arith.constant 0 : index
    %c0_144 = arith.constant 0 : index
    %425 = vector.load %arg15[%c0_142, %c0_143, %c0_144] : memref<2x8x32xf32, #tpu.memory_space<vmem>>, vector<1x8x32xf32>
    %426 = vector.shape_cast %425 : vector<1x8x32xf32> to vector<8x32xf32>
    %427 = vector.shape_cast %396 : vector<8x32xf32> to vector<1x8x32xf32>
    tpu.vector_store %arg15[%c0_142, %c0_143, %c0_144], %427 {strides = array<i32>} : memref<2x8x32xf32, #tpu.memory_space<vmem>>, vector<1x8x32xf32>,
    %c1_145 = arith.constant 1 : index
    %c0_146 = arith.constant 0 : index
    %c0_147 = arith.constant 0 : index
    %428 = vector.load %arg14[%c1_145, %c0_146, %c0_147] : memref<2x8x32xf32, #tpu.memory_space<vmem>>, vector<1x8x32xf32>
    %429 = vector.shape_cast %428 : vector<1x8x32xf32> to vector<8x32xf32>
    %430 = vector.shape_cast %420 : vector<8x32xf32> to vector<1x8x32xf32>
    tpu.vector_store %arg14[%c1_145, %c0_146, %c0_147], %430 {strides = array<i32>} : memref<2x8x32xf32, #tpu.memory_space<vmem>>, vector<1x8x32xf32>,
    %c1_148 = arith.constant 1 : index
    %c0_149 = arith.constant 0 : index
    %c0_150 = arith.constant 0 : index
    %431 = vector.load %arg15[%c1_148, %c0_149, %c0_150] : memref<2x8x32xf32, #tpu.memory_space<vmem>>, vector<1x8x32xf32>
    %432 = vector.shape_cast %431 : vector<1x8x32xf32> to vector<8x32xf32>
    %433 = vector.shape_cast %418 : vector<8x32xf32> to vector<1x8x32xf32>
    tpu.vector_store %arg15[%c1_148, %c0_149, %c0_150], %433 {strides = array<i32>} : memref<2x8x32xf32, #tpu.memory_space<vmem>>, vector<1x8x32xf32>,
    %c0_151 = arith.constant 0 : index
    %c0_152 = arith.constant 0 : index
    %434 = vector.load %arg18[%c0_151, %c0_152] : memref<64x32xf32, #tpu.memory_space<vmem>>, vector<64x32xf32>
    %435 = arith.truncf %434 : vector<64x32xf32> to vector<64x32xbf16>
    %c0_153 = arith.constant 0 : index
    %c0_154 = arith.constant 0 : index
    %436 = vector.load %arg11[%c0_153, %c0_154] : memref<32x128xbf16, #tpu.memory_space<vmem>>, vector<32x128xbf16>
    %cst_155 = arith.constant dense<0.000000e+00> : vector<64x128xf32>
    %437 = tpu.matmul %435, %436, %cst_155 {dimension_numbers = #tpu.dot_dimension_numbers<[1], [0], [0], [1], [0, 0, 1, 1], [], []>} : vector<64x32xbf16>, vector<32x128xbf16>, vector<64x128xf32> -> vector<64x128xf32>
    %c0_156 = arith.constant 0 : index
    %c0_157 = arith.constant 0 : index
    %438 = vector.load %arg12[%c0_156, %c0_157] : memref<1x128xf32, #tpu.memory_space<vmem>>, vector<1x128xf32>
    %439 = vector.broadcast %438 : vector<1x128xf32> to vector<64x128xf32>
    %440 = arith.addf %437, %439 : vector<64x128xf32>
    %c0_158 = arith.constant 0 : index
    %c0_159 = arith.constant 0 : index
    %441 = vector.load %arg13[%c0_158, %c0_159] : memref<64x128xf32, #tpu.memory_space<vmem>>, vector<64x128xf32>
    tpu.vector_store %arg13[%c0_158, %c0_159], %440 {strides = array<i32>} : memref<64x128xf32, #tpu.memory_space<vmem>>, vector<64x128xf32>,
    return
  }
  func.func @transform_0(%arg0: i32) -> i32 {
    %c0_i32 = arith.constant 0 : i32
    %c0_i32_0 = arith.constant 0 : i32
    return %c0_i32 : i32
  }
  func.func @transform_1(%arg0: i32) -> (i32, i32) {
    %c0_i32 = arith.constant 0 : i32
    %c0_i32_0 = arith.constant 0 : i32
    %c0_i32_1 = arith.constant 0 : i32
    return %c0_i32, %c0_i32_0 : i32, i32
  }
  func.func @transform_2(%arg0: i32) -> (i32, i32, i32) {
    %c0_i32 = arith.constant 0 : i32
    %c0_i32_0 = arith.constant 0 : i32
    %c0_i32_1 = arith.constant 0 : i32
    %c0_i32_2 = arith.constant 0 : i32
    return %c0_i32, %c0_i32_0, %c0_i32_1 : i32, i32, i32
  }
  func.func @transform_3(%arg0: i32) -> (i32, i32, i32) {
    %c0_i32 = arith.constant 0 : i32
    %c0_i32_0 = arith.constant 0 : i32
    %c0_i32_1 = arith.constant 0 : i32
    %c0_i32_2 = arith.constant 0 : i32
    return %c0_i32, %c0_i32_0, %c0_i32_1 : i32, i32, i32
  }
  func.func @transform_4(%arg0: i32) -> (i32, i32) {
    %c0_i32 = arith.constant 0 : i32
    %c0_i32_0 = arith.constant 0 : i32
    %c0_i32_1 = arith.constant 0 : i32
    return %c0_i32, %c0_i32_0 : i32, i32
  }
  func.func @transform_5(%arg0: i32) -> (i32, i32) {
    %c0_i32 = arith.constant 0 : i32
    %c0_i32_0 = arith.constant 0 : i32
    %c0_i32_1 = arith.constant 0 : i32
    return %c0_i32, %c0_i32_0 : i32, i32
  }
  func.func @transform_6(%arg0: i32) -> (i32, i32) {
    %c0_i32 = arith.constant 0 : i32
    %c0_i32_0 = arith.constant 0 : i32
    %c0_i32_1 = arith.constant 0 : i32
    return %c0_i32, %c0_i32_0 : i32, i32
  }
  func.func @transform_7(%arg0: i32) -> (i32, i32) {
    %c0_i32 = arith.constant 0 : i32
    %c0_i32_0 = arith.constant 0 : i32
    %c0_i32_1 = arith.constant 0 : i32
    return %c0_i32, %c0_i32_0 : i32, i32
  }
  func.func @transform_8(%arg0: i32) -> (i32, i32) {
    %c0_i32 = arith.constant 0 : i32
    %c0_i32_0 = arith.constant 0 : i32
    %c0_i32_1 = arith.constant 0 : i32
    return %c0_i32, %c0_i32_0 : i32, i32
  }
  func.func @transform_9(%arg0: i32) -> (i32, i32) {
    %c0_i32 = arith.constant 0 : i32
    %c0_i32_0 = arith.constant 0 : i32
    %c0_i32_1 = arith.constant 0 : i32
    return %c0_i32, %c0_i32_0 : i32, i32
  }
  func.func @transform_10(%arg0: i32) -> (i32, i32) {
    %c0_i32 = arith.constant 0 : i32
    %c0_i32_0 = arith.constant 0 : i32
    %c0_i32_1 = arith.constant 0 : i32
    return %c0_i32, %c0_i32_0 : i32, i32
  }
  func.func @transform_11(%arg0: i32) -> (i32, i32) {
    %c0_i32 = arith.constant 0 : i32
    %c0_i32_0 = arith.constant 0 : i32
    %c0_i32_1 = arith.constant 0 : i32
    return %c0_i32, %c0_i32_0 : i32, i32
  }
  func.func @transform_12(%arg0: i32) -> (i32, i32) {
    %c0_i32 = arith.constant 0 : i32
    %c0_i32_0 = arith.constant 0 : i32
    %c0_i32_1 = arith.constant 0 : i32
    return %c0_i32, %c0_i32_0 : i32, i32
  }
  func.func @transform_13(%arg0: i32) -> (i32, i32, i32) {
    %c0_i32 = arith.constant 0 : i32
    %c0_i32_0 = arith.constant 0 : i32
    %c0_i32_1 = arith.constant 0 : i32
    %c0_i32_2 = arith.constant 0 : i32
    return %c0_i32, %c0_i32_0, %c0_i32_1 : i32, i32, i32
  }
  func.func @transform_14(%arg0: i32) -> (i32, i32, i32) {
    %c0_i32 = arith.constant 0 : i32
    %c0_i32_0 = arith.constant 0 : i32
    %c0_i32_1 = arith.constant 0 : i32
    %c0_i32_2 = arith.constant 0 : i32
    return %c0_i32, %c0_i32_0, %c0_i32_1 : i32, i32, i32
  }
}

</mosaic_0001>

<bundles_post_ra>
// kernel: tpu_custom_call.1
= control target key start
LH: loop header
LB: loop body
LE: loop exit
PB: predicated region body
PF: predicated region fallthrough
CT: control target
= control target key end

     0   :  { %s3384_s0 = inlined_call_operand.vmem [shape: s32[16], index: 0, kind: input, shape index: {}]   ;;  %s3385_s1 = inlined_call_operand.vmem [shape: f32[50,32], index: 1, kind: input, shape index: {}]   ;;  %s3386_s2 = inlined_call_operand.vmem [shape: f32[2,8,32], index: 2, kind: input, shape index: {}]   ;;  %s3387_s3 = inlined_call_operand.vmem [shape: f32[2,8,32], index: 3, kind: input, shape index: {}]   ;;  %s3388_s4 = inlined_call_operand.vmem [shape: bf16[32,128], index: 4, kind: input, shape index: {}]   ;;  %s3389_s5 = inlined_call_operand.vmem [shape: bf16[32,128], index: 5, kind: input, shape index: {}]   ;;  %s3390_s6 = inlined_call_operand.vmem [shape: f32[1,128], index: 6, kind: input, shape index: {}]   ;;  %s3391_s7 = inlined_call_operand.vmem [shape: bf16[32,128], index: 7, kind: input, shape index: {}]   ;;  %s3392_s8 = inlined_call_operand.vmem [shape: bf16[32,128], index: 8, kind: input, shape index: {}]   ;;  %s3393_s9 = inlined_call_operand.vmem [shape: f32[1,128], index: 9, kind: input, shape index: {}]   ;;  %s3394_s10 = inlined_call_operand.vmem [shape: bf16[32,128], index: 10, kind: input, shape index: {}]   ;;  %s3395_s11 = inlined_call_operand.vmem [shape: f32[1,128], index: 11, kind: input, shape index: {}]   ;;  %s3396_s12 = inlined_call_operand.hbm [shape: f32[64,128], index: 12, kind: output, shape index: {0}]   ;;  %s3397_s13 = inlined_call_operand.hbm [shape: f32[2,8,32], index: 13, kind: output, shape index: {1}]   ;;  %s3398_s14 = inlined_call_operand.hbm [shape: f32[2,8,32], index: 14, kind: output, shape index: {2}]  }
   0x1   :  { %3404 = sst [smem:[#allocation15_spill]] %s3395_s11 }
   0x2   :  { %3405 = sst [smem:[#allocation16_spill]] %s3396_s12 }
   0x3   :  { %20 = vsyncpa [#allocation7], 0 }
   0x4   :  { %21 = vsyncpa [#allocation6], 0 }
   0x5   :  { %22 = vsyncpa [#allocation10], 0  ;;  %s29_s15 = sshll.u32 %s3384_s0, 4  ;;  %s30_s15 = int_to_ptr.vmem [resolvable:$true] %s29_s15 }
   0x6   :  { %s2620_s16 = scalar_lea.vmem %s30_s15, 16  ;;  %p2625_p1 = scmp.lt.s32.totalorder %s30_s15, %s30_s15 }
   0x7   :  { %p2621_p0 = scmp.ne.s32.totalorder %s30_s15, %s2620_s16  ;;  %p2626_p2 = scmp.lt.s32.totalorder %s2620_s16, %s2620_s16 }
   0x9   :  { %p2627_p3 = por %p2626_p2, %p2625_p1 }
   0xb   :  { %p2628_p4 = pnand %p2627_p3, %p2621_p0 }
   0xd   :  { %2631 = shalt.err (!%p2628_p4)
}
   0xe   :  { %s2704_s17 = smov [#allocation5]  }
   0xf   :  { %32 = dma.vmem_to_smem %s30_s15, 16, %s2704_s17, [#allocation7]  }
  0x10   :  { %2698 = dma.done.wait [#allocation7], 16  }
  0x11   :  { %2699 = vsyncadd [#allocation7], 4294967280 }
  0x12   :  { %58 = sfence }
  0x13   :  { %v2475_v0 = vld [vmem:[%s3388_s4] sm:$0xff]   ;;  %v2705_v1 = vmov 0.0   ;;  %vm60_vm0 = vcmask 261120   ;;  %v2477_v3 = vld [vmem:[%s3388_s4 + $0x8] sm:$0xff]   ;;  %s69_s24 = sld [smem:[#allocation5]]  ;;  %vm72_vm1 = vcmask 253952  }
  0x14   :  { %2220 = vmatprep.subr.bf16.mxu1 %v2705_v1  ;;  %v2800_v2 = vld [vmem:[%s3389_s5] sm:$0xff]   ;;  %2208 = vmatprep.subr.bf16.mxu0 %v2475_v0  ;;  %61 = vst.msk [vmem:[#allocation2] sm:$0xff] %vm60_vm0, %v2705_v1  ;;  %62 = vst.msk [vmem:[#allocation2 + $0x8] sm:$0xff] %vm60_vm0, %v2705_v1  ;;  %v2825_v4 = vld [vmem:[%s3389_s5 + $0x8] sm:$0xff]   ;;  %s2046_s25 = sld [smem:[#allocation5 + $0x1]]  ;;  %s2047_s28 = sld [smem:[#allocation5 + $0x2]] }
  0x15   :  { %63 = vst.msk [vmem:[#allocation2 + $0x10] sm:$0xff] %vm60_vm0, %v2705_v1  ;;  %64 = vst.msk [vmem:[#allocation2 + $0x18] sm:$0xff] %vm60_vm0, %v2705_v1  ;;  %2209 = vmatpush3.bf16.msra.mxu0 %v2475_v0  ;;  %2221 = vmatpush3.bf16.msra.mxu1 %v2800_v2  ;;  %v267_v5 = vld [vmem:[%s3386_s2] sm:$0xff]  ;;  %s2048_s29 = sld [smem:[#allocation5 + $0x3]]  ;;  %vm2706_vm2 = vmmov 0   ;;  %s2049_s30 = sld [smem:[#allocation5 + $0x4]] }
  0x16   :  { %65 = vst.msk [vmem:[#allocation2 + $0x20] sm:$0xff] %vm60_vm0, %v2705_v1  ;;  %66 = vst.msk [vmem:[#allocation2 + $0x28] sm:$0xff] %vm60_vm0, %v2705_v1  ;;  %2210 = vmatprep.subr.bf16.mxu0 %v2477_v3  ;;  %2222 = vmatprep.subr.bf16.mxu1 %v2705_v1  ;;  %s2050_s15 = sld [smem:[#allocation5 + $0x5]]  ;;  %v274_v6 = vpack.c.bf16 %v267_v5, %v267_v5  ;;  %s2051_s16 = sld [smem:[#allocation5 + $0x6]]  ;;  %v2880_v25 = vld [vmem:[%s3390_s6] ss:$0 sm:$0xff] }
  0x17   :  { %67 = vst.msk [vmem:[#allocation2 + $0x30] sm:$0xff] %vm60_vm0, %v2705_v1  ;;  %68 = vst.msk [vmem:[#allocation2 + $0x38] sm:$0xff] %vm60_vm0, %v2705_v1  ;;  %2224 = vmatprep.mubr.msk.bf16.mxu1 %vm2706_vm2, %v2705_v1  ;;  %s2052_s17 = sld [smem:[#allocation5 + $0x7]]  ;;  %v270_v33 = vld [vmem:[%s3387_s3] sm:$0xff]  ;;  %s3400_s23 = smov 32   ;;  %v2907_v45 = vld [vmem:[%s3391_s7 + $0x8] sm:$0xff]  }
  0x18   :  { %s2054_s27 = sld [smem:[#allocation5 + $0x9]]  ;;  %v2901_v44 = vld [vmem:[%s3391_s7] sm:$0xff]   ;;  %s2056_s19 = sld [smem:[#allocation5 + $0xb]] }
  0x19   :  { %2211 = vmatpush3.bf16.msra.mxu0 %v2477_v3  ;;  %2223 = vmatpush3.bf16.msra.mxu1 %v2825_v4  ;;  %s70_s0 = scalar_lea.vmem %s3385_s1, %s69_s24  ;;  %s2060_s21 = sld [smem:[#allocation5 + $0xf]] }
  0x1a   :  { %2244 = vmatprep.subr.bf16.mxu0 %v2705_v1  ;;  %2228 = vmatprep.subr.bf16.mxu1 %v2705_v1  ;;  %s75_s22 = scalar_lea.vmem %s3385_s1, %s2046_s25  ;;  %v71_v7 = vld [vmem:[%s70_s0] sm:$0x1]  ;;  %s79_s26 = scalar_lea.vmem %s3385_s1, %s2047_s28 }
  0x1b   :  { %v76_v8 = vld [vmem:[%s75_s22] sm:$0x1]  ;;  %s83_s11 = scalar_lea.vmem %s3385_s1, %s2048_s29  ;;  %73 = vst.msk [vmem:[#allocation2] sm:$0x1] %vm72_vm1, %v71_v7  ;;  %s87_s18 = scalar_lea.vmem %s3385_s1, %s2049_s30 }
  0x1c   :  { %2225 = vmatmul.mubr.msk.bf16.vlgmr.msra.gmra.mrb[0].mxu1 %vm60_vm0, %v274_v6  ;;  %77 = vst.msk [vmem:[#allocation2 + $0x1] sm:$0x1] %vm72_vm1, %v76_v8  ;;  %v80_v9 = vld [vmem:[%s79_s26] sm:$0x1]  ;;  %s91_s28 = scalar_lea.vmem %s3385_s1, %s2050_s15  ;;  %s95_s20 = scalar_lea.vmem %s3385_s1, %s2051_s16 }
  0x1d   :  { %2232 = vmatprep.mubr.msk.bf16.mxu1 %vm2706_vm2, %v2705_v1  ;;  %v84_v10 = vld [vmem:[%s83_s11] sm:$0x1]  ;;  %81 = vst.msk [vmem:[#allocation2 + $0x8] sm:$0x1] %vm72_vm1, %v80_v9  ;;  %s99_s22 = scalar_lea.vmem %s3385_s1, %s2052_s17  ;;  %s3402_s16 = smov 64   ;;  %2229 = vmatpush3.bf16.msra.mxu1 %v2901_v44  ;;  %v2969_v9 = vld [vmem:[%s3392_s8 + $0x8] sm:$0xff]  }
  0x1e   :  { %85 = vst.msk [vmem:[#allocation2 + $0x9] sm:$0x1] %vm72_vm1, %v84_v10  ;;  %v88_v11 = vld [vmem:[%s87_s18] sm:$0x1]  ;;  %s2053_s26 = sld [smem:[#allocation5 + $0x8]]  ;;  %s2055_s18 = sld [smem:[#allocation5 + $0xa]]  ;;  %2230 = vmatprep.subr.bf16.mxu1 %v2705_v1 }
  0x1f   :  { %v92_v12 = vld [vmem:[%s91_s28] sm:$0x1]  ;;  %89 = vst.msk [vmem:[#allocation2 + $0x10] sm:$0x1] %vm72_vm1, %v88_v11  ;;  %s2057_s0 = sld [smem:[#allocation5 + $0xc]]  ;;  %s2058_s28 = sld [smem:[#allocation5 + $0xd]] }
  0x20   :  { %93 = vst.msk [vmem:[#allocation2 + $0x11] sm:$0x1] %vm72_vm1, %v92_v12  ;;  %v96_v13 = vld [vmem:[%s95_s20] sm:$0x1]  ;;  %s2059_s20 = sld [smem:[#allocation5 + $0xe]]  ;;  %s107_s4 = scalar_lea.vmem %s3385_s1, %s2054_s27  ;;  %v2068_v10 = vld [vmem:[%s3386_s2 + $0x8] sm:$0xff] }
  0x21   :  { %v100_v14 = vld [vmem:[%s99_s22] sm:$0x1]  ;;  %97 = vst.msk [vmem:[#allocation2 + $0x18] sm:$0x1] %vm72_vm1, %v96_v13  ;;  %2231 = vmatpush3.bf16.msra.mxu1 %v2907_v45  ;;  %s3406_s15 = smov 64   ;;  %v424_v11 = vpack.c.bf16 %v2068_v10, %v2068_v10 }
  0x22   :  { %101 = vst.msk [vmem:[#allocation2 + $0x19] sm:$0x1] %vm72_vm1, %v100_v14  ;;  %v108_v47 = vld [vmem:[%s107_s4] sm:$0x1]  ;;  %2236 = vmatprep.subr.bf16.mxu1 %v2705_v1 }
  0x23   :  { %v152_v15 = vld [vmem:[#allocation2] sm:$0xff]  ;;  %109 = vst.msk [vmem:[#allocation2 + $0x21] sm:$0x1] %vm72_vm1, %v108_v47 }
  0x24   :  { %s103_s30 = scalar_lea.vmem %s3385_s1, %s2053_s26  ;;  %s111_s12 = scalar_lea.vmem %s3385_s1, %s2055_s18  ;;  %v2961_v7 = vld [vmem:[%s3392_s8] sm:$0xff]  }
  0x25   :  { %v153_v16 = vld [vmem:[#allocation2 + $0x8] sm:$0xff]  ;;  %v104_v46 = vld [vmem:[%s103_s30] sm:$0x1]  ;;  %s119_s11 = scalar_lea.vmem %s3385_s1, %s2057_s0  ;;  %s123_s18 = scalar_lea.vmem %s3385_s1, %s2058_s28 }
  0x26   :  { %v160_v17 = vpack.c.bf16 %v153_v16, %v152_v15  ;;  %105 = vst.msk [vmem:[#allocation2 + $0x20] sm:$0x1] %vm72_vm1, %v104_v46  ;;  %v112_v49 = vld [vmem:[%s111_s12] sm:$0x1]  ;;  %s131_s0 = scalar_lea.vmem %s3385_s1, %s2060_s21 }
  0x27   :  { %v154_v18 = vld [vmem:[#allocation2 + $0x10] sm:$0xff]  ;;  %113 = vst.msk [vmem:[#allocation2 + $0x28] sm:$0x1] %vm72_vm1, %v112_v49  ;;  %v120_v51 = vld [vmem:[%s119_s11] sm:$0x1] }
  0x28   :  { %2212 = vmatprep.mubr.msk.bf16.mxu0 %vm60_vm0, %v160_v17  ;;  %v124_v52 = vld [vmem:[%s123_s18] sm:$0x1]  ;;  %121 = vst.msk [vmem:[#allocation2 + $0x30] sm:$0x1] %vm72_vm1, %v120_v51 }
  0x29   :  { %v155_v19 = vld [vmem:[#allocation2 + $0x18] sm:$0xff]  ;;  %125 = vst.msk [vmem:[#allocation2 + $0x31] sm:$0x1] %vm72_vm1, %v124_v52  ;;  %v132_v54 = vld [vmem:[%s131_s0] sm:$0x1] }
  0x2a   :  { %v161_v20 = vpack.c.bf16 %v155_v19, %v154_v18  ;;  %133 = vst.msk [vmem:[#allocation2 + $0x39] sm:$0x1] %vm72_vm1, %v132_v54  ;;  %v2997_v18 = vld [vmem:[%s3393_s9] ss:$0 sm:$0xff] }
  0x2c   :  { %2213 = vmatmul.mubr.msk.bf16.vlgmr.msra.gmra.mrb[0].mxu0 %vm60_vm0, %v161_v20 }
  0x2d   :  { %2245 = vmatpush3.bf16.msra.mxu0 %v2800_v2  ;;  %v156_v55 = vld [vmem:[#allocation2 + $0x20] sm:$0xff] }
  0x2e   :  { %2246 = vmatprep.subr.bf16.mxu0 %v2705_v1 }
  0x30   :  { %v158_v58 = vld [vmem:[#allocation2 + $0x30] sm:$0xff] }
  0x31   :  { %2247 = vmatpush3.bf16.msra.mxu0 %v2825_v4 }
  0x32   :  { %2252 = vmatprep.subr.bf16.mxu0 %v2705_v1 }
  0xef   :  { %v324_v21 = vpop.f32.mrb[0].mxu1 }
  0xf0   :  { %v2226_v22 = vpop.f32.mrb[1].mxu1 }
  0xf1   :  { %v327_v23 = vpop.f32.mrb[2].mxu1 }
  0xf2   :  { %v2227_v24 = vpop.f32.mrb[3].mxu1 }
  0xff   :  { %v2882_v26 = vpop.f32.mrb[0].mxu0 }
 0x100   :  { %v228_v27 = vpop.f32.mrb[1].mxu0 }
 0x101   :  { %v229_v28 = vadd.f32 %v2880_v25, %v228_v27  ;;  %v2885_v29 = vpop.f32.mrb[2].mxu0 }
 0x102   :  { %v2887_v30 = vpop.f32.mrb[3].mxu0 }
 0x103   :  { %v330_v31 = vadd.f32 %v324_v21, %v229_v28  ;;  %v232_v12 = vadd.f32 %v2880_v25, %v2887_v30  ;;  %v2069_v28 = vld [vmem:[%s3387_s3 + $0x8] sm:$0xff] }
 0x105   :  { %2485 = vtanh.f32 %v330_v31  ;;  %v2073_v34 = vmul.f32 -1.442695, %v330_v31 }
 0x107   :  { %2487 = vpow2.f32 %v2073_v34 }
 0x10f   :  { %v2486_v32 = vpop.eup %2485 }
 0x110   :  { %344 = vrot.lane.b32.xlu0 %v2486_v32, %s3402_s16  ;;  %s115_s16 = scalar_lea.vmem %s3385_s1, %s2056_s19 }
 0x111   :  { %v2488_v35 = vpop.eup %2487  ;;  %v116_v50 = vld [vmem:[%s115_s16] sm:$0x1]  ;;  %s127_s16 = scalar_lea.vmem %s3385_s1, %s2059_s20  ;;  %s3407_s1 = smov 32  }
 0x112   :  { %v334_v36 = vadd.f32 1.0, %v2488_v35  ;;  %117 = vst.msk [vmem:[#allocation2 + $0x29] sm:$0x1] %vm72_vm1, %v116_v50  ;;  %v128_v53 = vld [vmem:[%s127_s16] sm:$0x1] }
 0x113   :  { %129 = vst.msk [vmem:[#allocation2 + $0x38] sm:$0x1] %vm72_vm1, %v128_v53 }
 0x114   :  { %339 = vrot.lane.b32.xlu0 %v270_v33, %s3400_s23  ;;  %2489 = vrcp.f32 %v334_v36 }
 0x119   :  { %v157_v56 = vld [vmem:[#allocation2 + $0x28] sm:$0xff] }
 0x11a   :  { %v162_v57 = vpack.c.bf16 %v157_v56, %v156_v55  ;;  %v159_v59 = vld [vmem:[#allocation2 + $0x38] sm:$0xff] }
 0x11b   :  { %v163_v60 = vpack.c.bf16 %v159_v59, %v158_v58 }
 0x11c   :  { %2216 = vmatprep.mubr.msk.bf16.mxu0 %vm60_vm0, %v162_v57 }
 0x11d   :  { %2217 = vmatmul.mubr.msk.bf16.gmra.mrb[4].mxu0 %vm60_vm0, %v163_v60 }
 0x11e   :  { %v2490_v37 = vpop.eup %2489  ;;  %2248 = vmatprep.mubr.msk.bf16.mxu0 %vm2706_vm2, %v2705_v1 }
 0x182   :  { %v345_v38 = vpop.permute.xlu0 %344 }
 0x183   :  { %v347_v39 = vmul.f32 %v2490_v37, %v345_v38 }
 0x185   :  { %349 = vrot.lane.b32.xlu1 %v347_v39, %s3400_s23 }
 0x186   :  { %v340_v40 = vpop.permute.xlu0 %339 }
 0x187   :  { %v342_v41 = vmul.f32 %v2490_v37, %v340_v40 }
 0x1f0   :  { %v2950_v0 = vpop.f32.mrb[4].mxu0 }
 0x1f1   :  { %v2952_v3 = vpop.f32.mrb[5].mxu0 }
 0x1f2   :  { %v2954_v5 = vpop.f32.mrb[6].mxu0 }
 0x1f3   :  { %v2956_v6 = vpop.f32.mrb[7].mxu0 }
 0x1f7   :  { %v350_v42 = vpop.permute.xlu1 %349 }
 0x1f8   :  { %v2895_v43 = vadd.f32 %v350_v42, %v342_v41 }
 0x1fa   :  { %2491 = vtanh.f32 %v2895_v43 }
 0x204   :  { %v2492_v48 = vpop.eup %2491 }
 0x205   :  { %355 = vrot.lane.b32.xlu1 %v2492_v48, %s3406_s15 }
 0x277   :  { %v356_v61 = vpop.permute.xlu1 %355 }
 0x278   :  { %v358_v62 = vmul.f32 %v2490_v37, %v356_v61  ;;  %v237_v61 = vadd.f32 %v2882_v26, %v2880_v25 }
 0x27a   :  { %v359_v63 = vpack.c.bf16 %v358_v62, %v358_v62 }
 0x27c   :  { %367 = vrot.lane.b32.xlu0 %v359_v63, %s3407_s1 }
 0x2ee   :  { %v368_v8 = vpop.permute.xlu0 %367 }
 0x2ef   :  { %2233 = vmatmul.mubr.msk.bf16.vlgmr.msra.gmra.mrb[4].mxu1 %vm60_vm0, %v368_v8  ;;  %2249 = vmatmul.mubr.msk.bf16.vlgmr.msra.gmra.mrb[8].mxu0 %vm60_vm0, %v368_v8 }
 0x2f0   :  { %2237 = vmatpush3.bf16.msra.mxu1 %v2961_v7  ;;  %2240 = vmatprep.mubr.msk.bf16.mxu1 %vm2706_vm2, %v2705_v1 }
 0x2f1   :  { %2238 = vmatprep.subr.bf16.mxu1 %v2705_v1  ;;  %2253 = vmatpush3.bf16.msra.mxu0 %v2901_v44 }
 0x2f2   :  { %2254 = vmatprep.subr.bf16.mxu0 %v2705_v1  ;;  %2256 = vmatprep.mubr.msk.bf16.mxu0 %vm2706_vm2, %v2705_v1 }
 0x2f4   :  { %2239 = vmatpush3.bf16.msra.mxu1 %v2969_v9 }
 0x2f5   :  { %2268 = vmatprep.subr.bf16.mxu1 %v2705_v1  ;;  %2255 = vmatpush3.bf16.msra.mxu0 %v2907_v45 }
 0x2f6   :  { %2260 = vmatprep.subr.bf16.mxu0 %v2705_v1 }
 0x2fb   :  { %2241 = vmatmul.mubr.msk.bf16.vlgmr.msra.gmra.mrb[4].mxu1 %vm60_vm0, %v424_v11 }
 0x2fc   :  { %2269 = vmatpush3.bf16.msra.mxu1 %v2800_v2  ;;  %2272 = vmatprep.mubr.msk.bf16.mxu1 %vm2706_vm2, %v2705_v1 }
 0x2fd   :  { %2270 = vmatprep.subr.bf16.mxu1 %v2705_v1 }
 0x300   :  { %2271 = vmatpush3.bf16.msra.mxu1 %v2825_v4 }
 0x301   :  { %2276 = vmatprep.subr.bf16.mxu1 %v2705_v1 }
 0x3c2   :  { %v549_v13 = vpop.f32.mrb[8].mxu0 }
 0x3c3   :  { %v555_v14 = vadd.f32 %v549_v13, %v232_v12  ;;  %v2250_v15 = vpop.f32.mrb[9].mxu0 }
 0x3c4   :  { %v552_v16 = vpop.f32.mrb[10].mxu0 }
 0x3c5   :  { %2493 = vtanh.f32 %v555_v14  ;;  %v2251_v17 = vpop.f32.mrb[11].mxu0  ;;  %v2083_v30 = vmul.f32 -1.442695, %v555_v14 }
 0x3ce   :  { %v474_v19 = vpop.f32.mrb[4].mxu1 }
 0x3cf   :  { %v2494_v20 = vpop.eup %2493  ;;  %v2424_v21 = vadd.f32 %v2997_v18, %v474_v19  ;;  %v2242_v22 = vpop.f32.mrb[5].mxu1 }
 0x3d0   :  { %565 = vrot.lane.b32.xlu1 %v2494_v20, %s3406_s15  ;;  %v477_v23 = vpop.f32.mrb[6].mxu1 }
 0x3d1   :  { %2495 = vtanh.f32 %v2424_v21  ;;  %v2243_v24 = vpop.f32.mrb[7].mxu1  ;;  %v2081_v31 = vmul.f32 -1.442695, %v2424_v21 }
 0x3d2   :  { %2497 = vpow2.f32 %v2083_v30 }
 0x3d3   :  { %2499 = vpow2.f32 %v2081_v31 }
 0x3db   :  { %v2496_v27 = vpop.eup %2495 }
 0x3dc   :  { %494 = vrot.lane.b32.xlu0 %v2496_v27, %s3406_s15  ;;  %v2498_v32 = vpop.eup %2497 }
 0x3dd   :  { %v559_v33 = vadd.f32 1.0, %v2498_v32  ;;  %v2500_v34 = vpop.eup %2499 }
 0x3de   :  { %v484_v35 = vadd.f32 1.0, %v2500_v34 }
 0x3df   :  { %2501 = vrcp.f32 %v559_v33 }
 0x3e0   :  { %489 = vrot.lane.b32.xlu0 %v2069_v28, %s3407_s1  ;;  %2503 = vrcp.f32 %v484_v35 }
 0x3e9   :  { %v2502_v36 = vpop.eup %2501 }
 0x3ea   :  { %v2504_v39 = vpop.eup %2503  ;;  %v563_v42 = vmul.f32 %v2502_v36, %v2895_v43 }
 0x442   :  { %v566_v37 = vpop.permute.xlu1 %565 }
 0x443   :  { %v568_v38 = vmul.f32 %v2502_v36, %v566_v37 }
 0x445   :  { %570 = vrot.lane.b32.xlu1 %v568_v38, %s3407_s1 }
 0x44e   :  { %v495_v40 = vpop.permute.xlu0 %494 }
 0x44f   :  { %v497_v41 = vmul.f32 %v2504_v39, %v495_v40 }
 0x451   :  { %499 = vrot.lane.b32.xlu1 %v497_v41, %s3407_s1 }
 0x452   :  { %v490_v48 = vpop.permute.xlu0 %489 }
 0x453   :  { %v492_v49 = vmul.f32 %v2504_v39, %v490_v48 }
 0x4b7   :  { %v571_v46 = vpop.permute.xlu1 %570 }
 0x4b8   :  { %v3009_v47 = vadd.f32 %v571_v46, %v563_v42 }
 0x4ba   :  { %2505 = vtanh.f32 %v3009_v47 }
 0x4c3   :  { %v500_v50 = vpop.permute.xlu1 %499 }
 0x4c4   :  { %v2506_v51 = vpop.eup %2505  ;;  %v3012_v52 = vadd.f32 %v500_v50, %v492_v49 }
 0x4c5   :  { %576 = vrot.lane.b32.xlu0 %v2506_v51, %s3406_s15 }
 0x4c6   :  { %2507 = vtanh.f32 %v3012_v52 }
 0x4d0   :  { %v2508_v53 = vpop.eup %2507 }
 0x4d1   :  { %505 = vrot.lane.b32.xlu1 %v2508_v53, %s3406_s15  ;;  %v240_v53 = vadd.f32 %v2885_v29, %v2880_v25 }
 0x537   :  { %v577_v54 = vpop.permute.xlu0 %576 }
 0x538   :  { %v579_v43 = vmul.f32 %v2502_v36, %v577_v54 }
 0x53a   :  { %v580_v55 = vpack.c.bf16 %v579_v43, %v579_v43 }
 0x53c   :  { %582 = vrot.lane.b32.xlu0 %v580_v55, %s3407_s1 }
 0x543   :  { %v506_v56 = vpop.permute.xlu1 %505 }
 0x544   :  { %v3018_v57 = vmul.f32 %v2504_v39, %v506_v56 }
 0x546   :  { %v627_v58 = vpack.c.bf16 %v3018_v57, %v3018_v57 }
 0x548   :  { %629 = vrot.lane.b32.xlu1 %v627_v58, %s3407_s1 }
 0x5ae   :  { %v583_v59 = vpop.permute.xlu0 %582 }
 0x5af   :  { %2257 = vmatmul.mubr.msk.bf16.vlgmr.msra.gmra.mrb[12].mxu0 %vm60_vm0, %v583_v59  ;;  %2273 = vmatmul.mubr.msk.bf16.vlgmr.msra.gmra.mrb[8].mxu1 %vm60_vm0, %v583_v59 }
 0x5b0   :  { %2261 = vmatpush3.bf16.msra.mxu0 %v2961_v7  ;;  %2264 = vmatprep.mubr.msk.bf16.mxu0 %vm2706_vm2, %v2705_v1 }
 0x5b1   :  { %2262 = vmatprep.subr.bf16.mxu0 %v2705_v1  ;;  %2277 = vmatpush3.bf16.msra.mxu1 %v2901_v44 }
 0x5b2   :  { %2278 = vmatprep.subr.bf16.mxu1 %v2705_v1  ;;  %2280 = vmatprep.mubr.msk.bf16.mxu1 %vm2706_vm2, %v2705_v1 }
 0x5b4   :  { %2263 = vmatpush3.bf16.msra.mxu0 %v2969_v9 }
 0x5b5   :  { %2292 = vmatprep.subr.bf16.mxu0 %v2705_v1  ;;  %2279 = vmatpush3.bf16.msra.mxu1 %v2907_v45 }
 0x5b6   :  { %2284 = vmatprep.subr.bf16.mxu1 %v2705_v1 }
 0x5ba   :  { %v630_v60 = vpop.permute.xlu1 %629 }
 0x5bb   :  { %2265 = vmatmul.mubr.msk.bf16.vlgmr.msra.gmra.mrb[12].mxu0 %vm60_vm0, %v630_v60 }
 0x5bc   :  { %2293 = vmatpush3.bf16.msra.mxu0 %v2800_v2  ;;  %2296 = vmatprep.mubr.msk.bf16.mxu0 %vm2706_vm2, %v2705_v1 }
 0x5bd   :  { %2294 = vmatprep.subr.bf16.mxu0 %v2705_v1 }
 0x5c0   :  { %2295 = vmatpush3.bf16.msra.mxu0 %v2825_v4 }
 0x5c1   :  { %2300 = vmatprep.subr.bf16.mxu0 %v2705_v1 }
 0x682   :  { %v739_v62 = vpop.f32.mrb[8].mxu1 }
 0x683   :  { %v745_v63 = vadd.f32 %v739_v62, %v237_v61  ;;  %v2274_v8 = vpop.f32.mrb[9].mxu1 }
 0x684   :  { %v742_v10 = vpop.f32.mrb[10].mxu1 }
 0x685   :  { %2509 = vtanh.f32 %v745_v63  ;;  %v2275_v11 = vpop.f32.mrb[11].mxu1  ;;  %v2088_v26 = vmul.f32 -1.442695, %v745_v63 }
 0x68e   :  { %v668_v12 = vpop.f32.mrb[12].mxu0 }
 0x68f   :  { %v2510_v13 = vpop.eup %2509  ;;  %v2425_v14 = vadd.f32 %v2997_v18, %v668_v12  ;;  %v2266_v15 = vpop.f32.mrb[13].mxu0 }
 0x690   :  { %v671_v16 = vpop.f32.mrb[14].mxu0  ;;  %755 = vrot.lane.b32.xlu0 %v2510_v13, %s3406_s15 }
 0x691   :  { %2511 = vtanh.f32 %v2425_v14  ;;  %v2267_v17 = vpop.f32.mrb[15].mxu0  ;;  %v2086_v20 = vmul.f32 -1.442695, %v2425_v14 }
 0x692   :  { %2513 = vpow2.f32 %v2088_v26 }
 0x693   :  { %2515 = vpow2.f32 %v2086_v20 }
 0x69b   :  { %v2512_v19 = vpop.eup %2511 }
 0x69c   :  { %684 = vrot.lane.b32.xlu1 %v2512_v19, %s3406_s15  ;;  %v2514_v21 = vpop.eup %2513 }
 0x69d   :  { %v749_v22 = vadd.f32 1.0, %v2514_v21  ;;  %v2516_v23 = vpop.eup %2515 }
 0x69e   :  { %v678_v24 = vadd.f32 1.0, %v2516_v23 }
 0x69f   :  { %2517 = vrcp.f32 %v749_v22 }
 0x6a0   :  { %2519 = vrcp.f32 %v678_v24 }
 0x6a9   :  { %v2518_v27 = vpop.eup %2517 }
 0x6aa   :  { %v2520_v31 = vpop.eup %2519  ;;  %v753_v34 = vmul.f32 %v2518_v27, %v3009_v47 }
 0x6ab   :  { %v682_v37 = vmul.f32 %v2520_v31, %v3012_v52 }
 0x702   :  { %v756_v28 = vpop.permute.xlu0 %755 }
 0x703   :  { %v758_v30 = vmul.f32 %v2518_v27, %v756_v28 }
 0x705   :  { %760 = vrot.lane.b32.xlu0 %v758_v30, %s3407_s1 }
 0x70e   :  { %v685_v32 = vpop.permute.xlu1 %684 }
 0x70f   :  { %v687_v33 = vmul.f32 %v2520_v31, %v685_v32 }
 0x711   :  { %689 = vrot.lane.b32.xlu1 %v687_v33, %s3407_s1 }
 0x777   :  { %v761_v35 = vpop.permute.xlu0 %760 }
 0x778   :  { %v3052_v36 = vadd.f32 %v761_v35, %v753_v34 }
 0x77a   :  { %2521 = vtanh.f32 %v3052_v36 }
 0x783   :  { %v690_v38 = vpop.permute.xlu1 %689 }
 0x784   :  { %v2522_v39 = vpop.eup %2521  ;;  %v3056_v40 = vadd.f32 %v690_v38, %v682_v37 }
 0x785   :  { %766 = vrot.lane.b32.xlu0 %v2522_v39, %s3406_s15 }
 0x786   :  { %2523 = vtanh.f32 %v3056_v40 }
 0x790   :  { %v2524_v41 = vpop.eup %2523 }
 0x791   :  { %695 = vrot.lane.b32.xlu1 %v2524_v41, %s3406_s15  ;;  %v245_v41 = vadd.f32 %v2880_v25, %v2952_v3 }
 0x7f7   :  { %v767_v42 = vpop.permute.xlu0 %766 }
 0x7f8   :  { %v769_v46 = vmul.f32 %v2518_v27, %v767_v42 }
 0x7fa   :  { %v770_v47 = vpack.c.bf16 %v769_v46, %v769_v46 }
 0x7fc   :  { %772 = vrot.lane.b32.xlu0 %v770_v47, %s3407_s1 }
 0x803   :  { %v696_v48 = vpop.permute.xlu1 %695 }
 0x804   :  { %v3062_v49 = vmul.f32 %v2520_v31, %v696_v48 }
 0x806   :  { %v817_v50 = vpack.c.bf16 %v3062_v49, %v3062_v49 }
 0x808   :  { %819 = vrot.lane.b32.xlu1 %v817_v50, %s3407_s1 }
 0x86e   :  { %v773_v51 = vpop.permute.xlu0 %772 }
 0x86f   :  { %2281 = vmatmul.mubr.msk.bf16.vlgmr.msra.gmra.mrb[12].mxu1 %vm60_vm0, %v773_v51  ;;  %2297 = vmatmul.mubr.msk.bf16.vlgmr.msra.gmra.mrb[16].mxu0 %vm60_vm0, %v773_v51 }
 0x870   :  { %2285 = vmatpush3.bf16.msra.mxu1 %v2961_v7  ;;  %2288 = vmatprep.mubr.msk.bf16.mxu1 %vm2706_vm2, %v2705_v1 }
 0x871   :  { %2286 = vmatprep.subr.bf16.mxu1 %v2705_v1  ;;  %2301 = vmatpush3.bf16.msra.mxu0 %v2901_v44 }
 0x872   :  { %2302 = vmatprep.subr.bf16.mxu0 %v2705_v1  ;;  %2304 = vmatprep.mubr.msk.bf16.mxu0 %vm2706_vm2, %v2705_v1 }
 0x874   :  { %2287 = vmatpush3.bf16.msra.mxu1 %v2969_v9 }
 0x875   :  { %2316 = vmatprep.subr.bf16.mxu1 %v2705_v1  ;;  %2303 = vmatpush3.bf16.msra.mxu0 %v2907_v45 }
 0x876   :  { %2308 = vmatprep.subr.bf16.mxu0 %v2705_v1 }
 0x87a   :  { %v820_v52 = vpop.permute.xlu1 %819 }
 0x87b   :  { %2289 = vmatmul.mubr.msk.bf16.vlgmr.msra.gmra.mrb[12].mxu1 %vm60_vm0, %v820_v52 }
 0x87c   :  { %2317 = vmatpush3.bf16.msra.mxu1 %v2800_v2  ;;  %2320 = vmatprep.mubr.msk.bf16.mxu1 %vm2706_vm2, %v2705_v1 }
 0x87d   :  { %2318 = vmatprep.subr.bf16.mxu1 %v2705_v1 }
 0x880   :  { %2319 = vmatpush3.bf16.msra.mxu1 %v2825_v4 }
 0x881   :  { %2324 = vmatprep.subr.bf16.mxu1 %v2705_v1 }
 0x942   :  { %v929_v54 = vpop.f32.mrb[16].mxu0 }
 0x943   :  { %v935_v43 = vadd.f32 %v929_v54, %v240_v53  ;;  %v2298_v55 = vpop.f32.mrb[17].mxu0 }
 0x944   :  { %v932_v56 = vpop.f32.mrb[18].mxu0 }
 0x945   :  { %2525 = vtanh.f32 %v935_v43  ;;  %v2299_v58 = vpop.f32.mrb[19].mxu0  ;;  %v2093_v29 = vmul.f32 -1.442695, %v935_v43 }
 0x94e   :  { %v858_v59 = vpop.f32.mrb[12].mxu1 }
 0x94f   :  { %v2526_v60 = vpop.eup %2525  ;;  %v2426_v61 = vadd.f32 %v2997_v18, %v858_v59  ;;  %v2290_v62 = vpop.f32.mrb[13].mxu1 }
 0x950   :  { %945 = vrot.lane.b32.xlu0 %v2526_v60, %s3406_s15  ;;  %v861_v63 = vpop.f32.mrb[14].mxu1 }
 0x951   :  { %2527 = vtanh.f32 %v2426_v61  ;;  %v2291_v8 = vpop.f32.mrb[15].mxu1  ;;  %v2091_v11 = vmul.f32 -1.442695, %v2426_v61 }
 0x952   :  { %2529 = vpow2.f32 %v2093_v29 }
 0x953   :  { %2531 = vpow2.f32 %v2091_v11 }
 0x95b   :  { %v2528_v10 = vpop.eup %2527 }
 0x95c   :  { %874 = vrot.lane.b32.xlu1 %v2528_v10, %s3406_s15  ;;  %v2530_v12 = vpop.eup %2529 }
 0x95d   :  { %v939_v13 = vadd.f32 1.0, %v2530_v12  ;;  %v2532_v14 = vpop.eup %2531 }
 0x95e   :  { %v868_v15 = vadd.f32 1.0, %v2532_v14 }
 0x95f   :  { %2533 = vrcp.f32 %v939_v13 }
 0x960   :  { %2535 = vrcp.f32 %v868_v15 }
 0x969   :  { %v2534_v16 = vpop.eup %2533 }
 0x96a   :  { %v2536_v26 = vpop.eup %2535  ;;  %v943_v22 = vmul.f32 %v2534_v16, %v3052_v36 }
 0x96b   :  { %v872_v27 = vmul.f32 %v2536_v26, %v3056_v40 }
 0x9c2   :  { %v946_v17 = vpop.permute.xlu0 %945 }
 0x9c3   :  { %v948_v19 = vmul.f32 %v2534_v16, %v946_v17 }
 0x9c5   :  { %950 = vrot.lane.b32.xlu0 %v948_v19, %s3407_s1 }
 0x9ce   :  { %v875_v20 = vpop.permute.xlu1 %874 }
 0x9cf   :  { %v877_v21 = vmul.f32 %v2536_v26, %v875_v20 }
 0x9d1   :  { %879 = vrot.lane.b32.xlu1 %v877_v21, %s3407_s1 }
 0xa37   :  { %v951_v23 = vpop.permute.xlu0 %950 }
 0xa38   :  { %v3096_v24 = vadd.f32 %v951_v23, %v943_v22 }
 0xa3a   :  { %2537 = vtanh.f32 %v3096_v24 }
 0xa43   :  { %v880_v28 = vpop.permute.xlu1 %879 }
 0xa44   :  { %v2538_v30 = vpop.eup %2537  ;;  %v3100_v31 = vadd.f32 %v880_v28, %v872_v27 }
 0xa45   :  { %956 = vrot.lane.b32.xlu0 %v2538_v30, %s3406_s15 }
 0xa46   :  { %2539 = vtanh.f32 %v3100_v31 }
 0xa50   :  { %v2540_v32 = vpop.eup %2539 }
 0xa51   :  { %885 = vrot.lane.b32.xlu1 %v2540_v32, %s3406_s15  ;;  %v248_v32 = vadd.f32 %v2880_v25, %v2956_v6 }
 0xab7   :  { %v957_v33 = vpop.permute.xlu0 %956 }
 0xab8   :  { %v959_v34 = vmul.f32 %v2534_v16, %v957_v33 }
 0xaba   :  { %v960_v35 = vpack.c.bf16 %v959_v34, %v959_v34 }
 0xabc   :  { %962 = vrot.lane.b32.xlu0 %v960_v35, %s3407_s1 }
 0xac3   :  { %v886_v36 = vpop.permute.xlu1 %885 }
 0xac4   :  { %v3106_v37 = vmul.f32 %v2536_v26, %v886_v36 }
 0xac6   :  { %v1007_v38 = vpack.c.bf16 %v3106_v37, %v3106_v37 }
 0xac8   :  { %1009 = vrot.lane.b32.xlu1 %v1007_v38, %s3407_s1 }
 0xb2e   :  { %v963_v39 = vpop.permute.xlu0 %962 }
 0xb2f   :  { %2305 = vmatmul.mubr.msk.bf16.vlgmr.msra.gmra.mrb[20].mxu0 %vm60_vm0, %v963_v39  ;;  %2321 = vmatmul.mubr.msk.bf16.vlgmr.msra.gmra.mrb[16].mxu1 %vm60_vm0, %v963_v39 }
 0xb30   :  { %2309 = vmatpush3.bf16.msra.mxu0 %v2961_v7  ;;  %2312 = vmatprep.mubr.msk.bf16.mxu0 %vm2706_vm2, %v2705_v1 }
 0xb31   :  { %2310 = vmatprep.subr.bf16.mxu0 %v2705_v1  ;;  %2325 = vmatpush3.bf16.msra.mxu1 %v2901_v44 }
 0xb32   :  { %2326 = vmatprep.subr.bf16.mxu1 %v2705_v1  ;;  %2328 = vmatprep.mubr.msk.bf16.mxu1 %vm2706_vm2, %v2705_v1 }
 0xb34   :  { %2311 = vmatpush3.bf16.msra.mxu0 %v2969_v9 }
 0xb35   :  { %2340 = vmatprep.subr.bf16.mxu0 %v2705_v1  ;;  %2327 = vmatpush3.bf16.msra.mxu1 %v2907_v45 }
 0xb36   :  { %2332 = vmatprep.subr.bf16.mxu1 %v2705_v1 }
 0xb3a   :  { %v1010_v40 = vpop.permute.xlu1 %1009 }
 0xb3b   :  { %2313 = vmatmul.mubr.msk.bf16.vlgmr.msra.gmra.mrb[20].mxu0 %vm60_vm0, %v1010_v40 }
 0xb3c   :  { %2341 = vmatpush3.bf16.msra.mxu0 %v2800_v2  ;;  %2344 = vmatprep.mubr.msk.bf16.mxu0 %vm2706_vm2, %v2705_v1 }
 0xb3d   :  { %2342 = vmatprep.subr.bf16.mxu0 %v2705_v1 }
 0xb40   :  { %2343 = vmatpush3.bf16.msra.mxu0 %v2825_v4 }
 0xb41   :  { %2348 = vmatprep.subr.bf16.mxu0 %v2705_v1 }
 0xc02   :  { %v1119_v42 = vpop.f32.mrb[16].mxu1 }
 0xc03   :  { %v1125_v46 = vadd.f32 %v1119_v42, %v245_v41  ;;  %v2322_v47 = vpop.f32.mrb[17].mxu1 }
 0xc04   :  { %v1122_v48 = vpop.f32.mrb[18].mxu1 }
 0xc05   :  { %2541 = vtanh.f32 %v1125_v46  ;;  %v2323_v50 = vpop.f32.mrb[19].mxu1  ;;  %v2098_v3 = vmul.f32 -1.442695, %v1125_v46 }
 0xc0e   :  { %v1048_v51 = vpop.f32.mrb[20].mxu0 }
 0xc0f   :  { %v2542_v52 = vpop.eup %2541  ;;  %v2427_v53 = vadd.f32 %v2997_v18, %v1048_v51  ;;  %v2314_v54 = vpop.f32.mrb[21].mxu0 }
 0xc10   :  { %v1051_v43 = vpop.f32.mrb[22].mxu0  ;;  %1135 = vrot.lane.b32.xlu0 %v2542_v52, %s3406_s15 }
 0xc11   :  { %2543 = vtanh.f32 %v2427_v53  ;;  %v2315_v55 = vpop.f32.mrb[23].mxu0  ;;  %v2096_v58 = vmul.f32 -1.442695, %v2427_v53 }
 0xc12   :  { %2545 = vpow2.f32 %v2098_v3 }
 0xc13   :  { %2547 = vpow2.f32 %v2096_v58 }
 0xc1b   :  { %v2544_v56 = vpop.eup %2543 }
 0xc1c   :  { %1064 = vrot.lane.b32.xlu1 %v2544_v56, %s3406_s15  ;;  %v2546_v59 = vpop.eup %2545 }
 0xc1d   :  { %v1129_v60 = vadd.f32 1.0, %v2546_v59  ;;  %v2548_v61 = vpop.eup %2547 }
 0xc1e   :  { %v1058_v62 = vadd.f32 1.0, %v2548_v61 }
 0xc1f   :  { %2549 = vrcp.f32 %v1129_v60 }
 0xc20   :  { %2551 = vrcp.f32 %v1058_v62 }
 0xc29   :  { %v2550_v63 = vpop.eup %2549 }
 0xc2a   :  { %v2552_v29 = vpop.eup %2551  ;;  %v1133_v13 = vmul.f32 %v2550_v63, %v3096_v24 }
 0xc2b   :  { %v1062_v16 = vmul.f32 %v2552_v29, %v3100_v31 }
 0xc82   :  { %v1136_v8 = vpop.permute.xlu0 %1135 }
 0xc83   :  { %v1138_v10 = vmul.f32 %v2550_v63, %v1136_v8 }
 0xc85   :  { %1140 = vrot.lane.b32.xlu0 %v1138_v10, %s3407_s1 }
 0xc8e   :  { %v1065_v11 = vpop.permute.xlu1 %1064 }
 0xc8f   :  { %v1067_v12 = vmul.f32 %v2552_v29, %v1065_v11 }
 0xc91   :  { %1069 = vrot.lane.b32.xlu1 %v1067_v12, %s3407_s1 }
 0xcf7   :  { %v1141_v14 = vpop.permute.xlu0 %1140 }
 0xcf8   :  { %v3140_v15 = vadd.f32 %v1141_v14, %v1133_v13 }
 0xcfa   :  { %2553 = vtanh.f32 %v3140_v15 }
 0xd03   :  { %v1070_v17 = vpop.permute.xlu1 %1069 }
 0xd04   :  { %v2554_v19 = vpop.eup %2553  ;;  %v3144_v26 = vadd.f32 %v1070_v17, %v1062_v16 }
 0xd05   :  { %1146 = vrot.lane.b32.xlu0 %v2554_v19, %s3406_s15  ;;  %v2614_v19 = vld [vmem:[%s3389_s5 + $0x8] sm:$0xff]  }
 0xd06   :  { %2555 = vtanh.f32 %v3144_v26 }
 0xd10   :  { %v2556_v20 = vpop.eup %2555 }
 0xd11   :  { %1075 = vrot.lane.b32.xlu1 %v2556_v20, %s3406_s15 }
 0xd77   :  { %v1147_v21 = vpop.permute.xlu0 %1146 }
 0xd78   :  { %v1149_v22 = vmul.f32 %v2550_v63, %v1147_v21 }
 0xd7a   :  { %v1150_v23 = vpack.c.bf16 %v1149_v22, %v1149_v22 }
 0xd7c   :  { %1152 = vrot.lane.b32.xlu0 %v1150_v23, %s3407_s1 }
 0xd83   :  { %v1076_v24 = vpop.permute.xlu1 %1075 }
 0xd84   :  { %v3150_v27 = vmul.f32 %v2552_v29, %v1076_v24 }
 0xd86   :  { %v1197_v28 = vpack.c.bf16 %v3150_v27, %v3150_v27 }
 0xd88   :  { %1199 = vrot.lane.b32.xlu1 %v1197_v28, %s3407_s1 }
 0xdee   :  { %v1153_v30 = vpop.permute.xlu0 %1152 }
 0xdef   :  { %2329 = vmatmul.mubr.msk.bf16.vlgmr.msra.gmra.mrb[20].mxu1 %vm60_vm0, %v1153_v30  ;;  %2345 = vmatmul.mubr.msk.bf16.vlgmr.msra.gmra.mrb[24].mxu0 %vm60_vm0, %v1153_v30 }
 0xdf0   :  { %2333 = vmatpush3.bf16.msra.mxu1 %v2961_v7  ;;  %2336 = vmatprep.mubr.msk.bf16.mxu1 %vm2706_vm2, %v2705_v1 }
 0xdf1   :  { %2334 = vmatprep.subr.bf16.mxu1 %v2705_v1  ;;  %2349 = vmatpush3.bf16.msra.mxu0 %v2901_v44 }
 0xdf2   :  { %2350 = vmatprep.subr.bf16.mxu0 %v2705_v1  ;;  %2352 = vmatprep.mubr.msk.bf16.mxu0 %vm2706_vm2, %v2705_v1 }
 0xdf4   :  { %2335 = vmatpush3.bf16.msra.mxu1 %v2969_v9 }
 0xdf5   :  { %2364 = vmatprep.subr.bf16.mxu1 %v2705_v1  ;;  %2351 = vmatpush3.bf16.msra.mxu0 %v2907_v45 }
 0xdf6   :  { %2356 = vmatprep.subr.bf16.mxu0 %v2705_v1 }
 0xdfa   :  { %v1200_v31 = vpop.permute.xlu1 %1199 }
 0xdfb   :  { %2337 = vmatmul.mubr.msk.bf16.vlgmr.msra.gmra.mrb[20].mxu1 %vm60_vm0, %v1200_v31 }
 0xdfc   :  { %2365 = vmatpush3.bf16.msra.mxu1 %v2800_v2  ;;  %2368 = vmatprep.mubr.msk.bf16.mxu1 %vm2706_vm2, %v2705_v1 }
 0xdfd   :  { %2366 = vmatprep.subr.bf16.mxu1 %v2705_v1 }
 0xe00   :  { %2367 = vmatpush3.bf16.msra.mxu1 %v2825_v4 }
 0xe01   :  { %2372 = vmatprep.subr.bf16.mxu1 %v2705_v1 }
 0xec2   :  { %v1309_v33 = vpop.f32.mrb[24].mxu0 }
 0xec3   :  { %v1315_v34 = vadd.f32 %v1309_v33, %v248_v32  ;;  %v2346_v35 = vpop.f32.mrb[25].mxu0 }
 0xec4   :  { %v1312_v36 = vpop.f32.mrb[26].mxu0 }
 0xec5   :  { %2557 = vtanh.f32 %v1315_v34  ;;  %v2347_v38 = vpop.f32.mrb[27].mxu0  ;;  %v2103_v6 = vmul.f32 -1.442695, %v1315_v34 }
 0xece   :  { %v1238_v39 = vpop.f32.mrb[20].mxu1 }
 0xecf   :  { %v2558_v2 = vpop.eup %2557  ;;  %v2428_v40 = vadd.f32 %v2997_v18, %v1238_v39  ;;  %v2338_v41 = vpop.f32.mrb[21].mxu1 }
 0xed0   :  { %1325 = vrot.lane.b32.xlu0 %v2558_v2, %s3406_s15  ;;  %v1241_v42 = vpop.f32.mrb[22].mxu1 }
 0xed1   :  { %2559 = vtanh.f32 %v2428_v40  ;;  %v2339_v4 = vpop.f32.mrb[23].mxu1  ;;  %v2101_v47 = vmul.f32 -1.442695, %v2428_v40 }
 0xed2   :  { %2561 = vpow2.f32 %v2103_v6 }
 0xed3   :  { %2563 = vpow2.f32 %v2101_v47 }
 0xedb   :  { %v2560_v46 = vpop.eup %2559 }
 0xedc   :  { %1254 = vrot.lane.b32.xlu1 %v2560_v46, %s3406_s15  ;;  %v2562_v48 = vpop.eup %2561 }
 0xedd   :  { %v1319_v50 = vadd.f32 1.0, %v2562_v48  ;;  %v2564_v51 = vpop.eup %2563 }
 0xede   :  { %v1248_v52 = vadd.f32 1.0, %v2564_v51 }
 0xedf   :  { %2565 = vrcp.f32 %v1319_v50 }
 0xee0   :  { %2567 = vrcp.f32 %v1248_v52 }
 0xee9   :  { %v2566_v53 = vpop.eup %2565 }
 0xeea   :  { %v2568_v55 = vpop.eup %2567  ;;  %v1323_v58 = vmul.f32 %v2566_v53, %v3140_v15 }
 0xeeb   :  { %v1252_v61 = vmul.f32 %v2568_v55, %v3144_v26 }
 0xf42   :  { %v1326_v54 = vpop.permute.xlu0 %1325 }
 0xf43   :  { %v1328_v43 = vmul.f32 %v2566_v53, %v1326_v54 }
 0xf45   :  { %1330 = vrot.lane.b32.xlu0 %v1328_v43, %s3407_s1 }
 0xf4e   :  { %v1255_v56 = vpop.permute.xlu1 %1254 }
 0xf4f   :  { %v1257_v3 = vmul.f32 %v2568_v55, %v1255_v56 }
 0xf51   :  { %1259 = vrot.lane.b32.xlu1 %v1257_v3, %s3407_s1 }
 0xfb7   :  { %v1331_v59 = vpop.permute.xlu0 %1330 }
 0xfb8   :  { %v3184_v60 = vadd.f32 %v1331_v59, %v1323_v58 }
 0xfba   :  { %2569 = vtanh.f32 %v3184_v60 }
 0xfc3   :  { %v1260_v62 = vpop.permute.xlu1 %1259 }
 0xfc4   :  { %v2570_v63 = vpop.eup %2569  ;;  %v3188_v8 = vadd.f32 %v1260_v62, %v1252_v61  ;;  %v2615_v61 = vld [vmem:[%s3391_s7] sm:$0xff]  }
 0xfc5   :  { %1336 = vrot.lane.b32.xlu0 %v2570_v63, %s3406_s15  ;;  %v2617_v63 = vld [vmem:[%s3390_s6] ss:$0 sm:$0xff] }
 0xfc6   :  { %2571 = vtanh.f32 %v3188_v8 }
 0xfd0   :  { %v2572_v10 = vpop.eup %2571 }
 0xfd1   :  { %1265 = vrot.lane.b32.xlu1 %v2572_v10, %s3406_s15 }
0x1037   :  { %v1337_v29 = vpop.permute.xlu0 %1336 }
0x1038   :  { %v1339_v11 = vmul.f32 %v2566_v53, %v1337_v29 }
0x103a   :  { %v1340_v12 = vpack.c.bf16 %v1339_v11, %v1339_v11 }
0x103c   :  { %1342 = vrot.lane.b32.xlu0 %v1340_v12, %s3407_s1 }
0x1043   :  { %v1266_v13 = vpop.permute.xlu1 %1265 }
0x1044   :  { %v3194_v14 = vmul.f32 %v2568_v55, %v1266_v13 }
0x1046   :  { %v1387_v15 = vpack.c.bf16 %v3194_v14, %v3194_v14 }
0x1048   :  { %1389 = vrot.lane.b32.xlu1 %v1387_v15, %s3407_s1 }
0x10ae   :  { %v1343_v16 = vpop.permute.xlu0 %1342 }
0x10af   :  { %2353 = vmatmul.mubr.msk.bf16.vlgmr.msra.gmra.mrb[28].mxu0 %vm60_vm0, %v1343_v16  ;;  %2369 = vmatmul.mubr.msk.bf16.vlgmr.msra.gmra.mrb[24].mxu1 %vm60_vm0, %v1343_v16 }
0x10b0   :  { %2357 = vmatpush3.bf16.msra.mxu0 %v2961_v7  ;;  %2360 = vmatprep.mubr.msk.bf16.mxu0 %vm2706_vm2, %v2705_v1 }
0x10b1   :  { %2358 = vmatprep.subr.bf16.mxu0 %v2705_v1  ;;  %2373 = vmatpush3.bf16.msra.mxu1 %v2901_v44  ;;  %v2613_v44 = vld [vmem:[%s3389_s5] sm:$0xff]  }
0x10b2   :  { %2374 = vmatprep.subr.bf16.mxu1 %v2705_v1  ;;  %2376 = vmatprep.mubr.msk.bf16.mxu1 %vm2706_vm2, %v2705_v1 }
0x10b4   :  { %2359 = vmatpush3.bf16.msra.mxu0 %v2969_v9 }
0x10b5   :  { %2388 = vmatprep.subr.bf16.mxu0 %v2705_v1  ;;  %2375 = vmatpush3.bf16.msra.mxu1 %v2907_v45  ;;  %v253_v45 = vadd.f32 %v2950_v0, %v2880_v25 }
0x10b6   :  { %2380 = vmatprep.subr.bf16.mxu1 %v2705_v1 }
0x10ba   :  { %v1390_v17 = vpop.permute.xlu1 %1389 }
0x10bb   :  { %2361 = vmatmul.mubr.msk.bf16.vlgmr.msra.gmra.mrb[28].mxu0 %vm60_vm0, %v1390_v17 }
0x10bc   :  { %2389 = vmatpush3.bf16.msra.mxu0 %v2613_v44  ;;  %2392 = vmatprep.mubr.msk.bf16.mxu0 %vm2706_vm2, %v2705_v1 }
0x10bd   :  { %2390 = vmatprep.subr.bf16.mxu0 %v2705_v1 }
0x10c0   :  { %2391 = vmatpush3.bf16.msra.mxu0 %v2614_v19 }
0x10c1   :  { %2396 = vmatprep.subr.bf16.mxu0 %v2705_v1 }
0x1182   :  { %v1499_v26 = vpop.f32.mrb[24].mxu1 }
0x1183   :  { %v1505_v20 = vadd.f32 %v1499_v26, %v253_v45  ;;  %v2370_v21 = vpop.f32.mrb[25].mxu1 }
0x1184   :  { %v1502_v22 = vpop.f32.mrb[26].mxu1 }
0x1185   :  { %2573 = vtanh.f32 %v1505_v20  ;;  %v2371_v23 = vpop.f32.mrb[27].mxu1  ;;  %v2108_v25 = vmul.f32 -1.442695, %v1505_v20 }
0x118e   :  { %v1428_v24 = vpop.f32.mrb[28].mxu0 }
0x118f   :  { %v2574_v28 = vpop.eup %2573  ;;  %v2429_v30 = vadd.f32 %v2997_v18, %v1428_v24  ;;  %v2362_v31 = vpop.f32.mrb[29].mxu0 }
0x1190   :  { %v1431_v32 = vpop.f32.mrb[30].mxu0  ;;  %1515 = vrot.lane.b32.xlu0 %v2574_v28, %s3406_s15 }
0x1191   :  { %2575 = vtanh.f32 %v2429_v30  ;;  %v2363_v33 = vpop.f32.mrb[31].mxu0  ;;  %v2106_v0 = vmul.f32 -1.442695, %v2429_v30 }
0x1192   :  { %2577 = vpow2.f32 %v2108_v25 }
0x1193   :  { %2579 = vpow2.f32 %v2106_v0 }
0x119b   :  { %v2576_v34 = vpop.eup %2575 }
0x119c   :  { %1444 = vrot.lane.b32.xlu1 %v2576_v34, %s3406_s15  ;;  %v2578_v35 = vpop.eup %2577 }
0x119d   :  { %v1509_v36 = vadd.f32 1.0, %v2578_v35  ;;  %v2580_v38 = vpop.eup %2579 }
0x119e   :  { %v1438_v39 = vadd.f32 1.0, %v2580_v38 }
0x119f   :  { %2581 = vrcp.f32 %v1509_v36 }
0x11a0   :  { %2583 = vrcp.f32 %v1438_v39 }
0x11a9   :  { %v2582_v2 = vpop.eup %2581 }
0x11aa   :  { %v2584_v42 = vpop.eup %2583  ;;  %v1513_v6 = vmul.f32 %v2582_v2, %v3184_v60 }
0x11ab   :  { %v1442_v50 = vmul.f32 %v2584_v42, %v3188_v8  ;;  %v256_v8 = vadd.f32 %v2617_v63, %v2954_v5 }
0x1202   :  { %v1516_v40 = vpop.permute.xlu0 %1515 }
0x1203   :  { %v1518_v41 = vmul.f32 %v2582_v2, %v1516_v40 }
0x1205   :  { %1520 = vrot.lane.b32.xlu0 %v1518_v41, %s3407_s1 }
0x120e   :  { %v1445_v4 = vpop.permute.xlu1 %1444 }
0x120f   :  { %v1447_v46 = vmul.f32 %v2584_v42, %v1445_v4 }
0x1211   :  { %1449 = vrot.lane.b32.xlu1 %v1447_v46, %s3407_s1 }
0x1277   :  { %v1521_v47 = vpop.permute.xlu0 %1520 }
0x1278   :  { %v3232_v48 = vadd.f32 %v1521_v47, %v1513_v6 }
0x127a   :  { %2585 = vtanh.f32 %v3232_v48 }
0x1283   :  { %v1450_v51 = vpop.permute.xlu1 %1449 }
0x1284   :  { %v2586_v52 = vpop.eup %2585  ;;  %v3236_v53 = vadd.f32 %v1450_v51, %v1442_v50  ;;  %v2619_v50 = vld [vmem:[%s3392_s8 + $0x8] sm:$0xff]  }
0x1285   :  { %1526 = vrot.lane.b32.xlu0 %v2586_v52, %s3406_s15 }
0x1286   :  { %2587 = vtanh.f32 %v3236_v53 }
0x1290   :  { %v2588_v54 = vpop.eup %2587 }
0x1291   :  { %1455 = vrot.lane.b32.xlu1 %v2588_v54, %s3406_s15 }
0x12f7   :  { %v1527_v43 = vpop.permute.xlu0 %1526 }
0x12f8   :  { %v1529_v55 = vmul.f32 %v2582_v2, %v1527_v43 }
0x12fa   :  { %v1530_v56 = vpack.c.bf16 %v1529_v55, %v1529_v55 }
0x12fc   :  { %1532 = vrot.lane.b32.xlu0 %v1530_v56, %s3407_s1 }
0x1303   :  { %v1456_v3 = vpop.permute.xlu1 %1455 }
0x1304   :  { %v3242_v58 = vmul.f32 %v2584_v42, %v1456_v3 }
0x1306   :  { %v1577_v59 = vpack.c.bf16 %v3242_v58, %v3242_v58 }
0x1308   :  { %1579 = vrot.lane.b32.xlu1 %v1577_v59, %s3407_s1 }
0x136e   :  { %v1533_v60 = vpop.permute.xlu0 %1532 }
0x136f   :  { %2377 = vmatmul.mubr.msk.bf16.vlgmr.msra.gmra.mrb[28].mxu1 %vm60_vm0, %v1533_v60  ;;  %2393 = vmatmul.mubr.msk.bf16.vlgmr.msra.gmra.mrb[32].mxu0 %vm60_vm0, %v1533_v60 }
0x1370   :  { %2381 = vmatpush3.bf16.msra.mxu1 %v2961_v7  ;;  %2384 = vmatprep.mubr.msk.bf16.mxu1 %vm2706_vm2, %v2705_v1  ;;  %v2616_v7 = vld [vmem:[%s3391_s7 + $0x8] sm:$0xff]  }
0x1371   :  { %2382 = vmatprep.subr.bf16.mxu1 %v2705_v1  ;;  %2397 = vmatpush3.bf16.msra.mxu0 %v2615_v61 }
0x1372   :  { %2398 = vmatprep.subr.bf16.mxu0 %v2705_v1  ;;  %2400 = vmatprep.mubr.msk.bf16.mxu0 %vm2706_vm2, %v2705_v1 }
0x1374   :  { %2383 = vmatpush3.bf16.msra.mxu1 %v2969_v9 }
0x1375   :  { %2399 = vmatpush3.bf16.msra.mxu0 %v2616_v7 }
0x1376   :  { %2404 = vmatprep.subr.bf16.mxu0 %v2705_v1 }
0x137a   :  { %v1580_v62 = vpop.permute.xlu1 %1579 }
0x137b   :  { %2385 = vmatmul.mubr.msk.bf16.vlgmr.msra.gmra.mrb[28].mxu1 %vm60_vm0, %v1580_v62 }
0x1442   :  { %v1689_v10 = vpop.f32.mrb[32].mxu0 }
0x1443   :  { %v1695_v29 = vadd.f32 %v1689_v10, %v256_v8  ;;  %v2394_v11 = vpop.f32.mrb[33].mxu0 }
0x1444   :  { %v1692_v9 = vpop.f32.mrb[34].mxu0 }
0x1445   :  { %2589 = vtanh.f32 %v1695_v29  ;;  %v2395_v12 = vpop.f32.mrb[35].mxu0  ;;  %v2113_v5 = vmul.f32 -1.442695, %v1695_v29  ;;  %v2484_v29 = vld [vmem:[%s3394_s10 + $0x8] sm:$0xff]  }
0x144e   :  { %v1618_v13 = vpop.f32.mrb[28].mxu1 }
0x144f   :  { %v2590_v15 = vpop.eup %2589  ;;  %v2430_v16 = vadd.f32 %v2997_v18, %v1618_v13  ;;  %v2386_v17 = vpop.f32.mrb[29].mxu1 }
0x1450   :  { %1705 = vrot.lane.b32.xlu0 %v2590_v15, %s3406_s15  ;;  %v1621_v44 = vpop.f32.mrb[30].mxu1 }
0x1451   :  { %2591 = vtanh.f32 %v2430_v16  ;;  %v2387_v19 = vpop.f32.mrb[31].mxu1  ;;  %v2111_v26 = vmul.f32 -1.442695, %v2430_v16 }
0x1452   :  { %2593 = vpow2.f32 %v2113_v5 }
0x1453   :  { %2595 = vpow2.f32 %v2111_v26 }
0x145b   :  { %v2592_v45 = vpop.eup %2591 }
0x145c   :  { %1634 = vrot.lane.b32.xlu1 %v2592_v45, %s3406_s15  ;;  %v2594_v20 = vpop.eup %2593 }
0x145d   :  { %v1699_v21 = vadd.f32 1.0, %v2594_v20  ;;  %v2596_v22 = vpop.eup %2595 }
0x145e   :  { %v1628_v23 = vadd.f32 1.0, %v2596_v22 }
0x145f   :  { %2597 = vrcp.f32 %v1699_v21 }
0x1460   :  { %2599 = vrcp.f32 %v1628_v23 }
0x1469   :  { %v2598_v24 = vpop.eup %2597 }
0x146a   :  { %v2600_v31 = vpop.eup %2599  ;;  %v1703_v34 = vmul.f32 %v2598_v24, %v3232_v48  ;;  %v2618_v48 = vld [vmem:[%s3392_s8] sm:$0xff]   ;;  %s2709_s8 = smov 96  }
0x146b   :  { %v1632_v35 = vmul.f32 %v2600_v31, %v3236_v53 }
0x14c2   :  { %v1706_v28 = vpop.permute.xlu0 %1705 }
0x14c3   :  { %v1708_v30 = vmul.f32 %v2598_v24, %v1706_v28 }
0x14c5   :  { %1710 = vrot.lane.b32.xlu0 %v1708_v30, %s3407_s1 }
0x14ce   :  { %v1635_v32 = vpop.permute.xlu1 %1634 }
0x14cf   :  { %v1637_v33 = vmul.f32 %v2600_v31, %v1635_v32 }
0x14d1   :  { %1639 = vrot.lane.b32.xlu1 %v1637_v33, %s3407_s1 }
0x1537   :  { %v1711_v25 = vpop.permute.xlu0 %1710 }
0x1538   :  { %v3275_v0 = vadd.f32 %v1711_v25, %v1703_v34 }
0x153a   :  { %2601 = vtanh.f32 %v3275_v0 }
0x1543   :  { %v1640_v36 = vpop.permute.xlu1 %1639 }
0x1544   :  { %v2602_v38 = vpop.eup %2601  ;;  %v1642_v39 = vadd.f32 %v1640_v36, %v1632_v35 }
0x1545   :  { %1716 = vrot.lane.b32.xlu0 %v2602_v38, %s3406_s15 }
0x1546   :  { %2603 = vtanh.f32 %v1642_v39 }
0x1550   :  { %v2604_v2 = vpop.eup %2603 }
0x1551   :  { %1645 = vrot.lane.b32.xlu1 %v2604_v2, %s3406_s15 }
0x15b7   :  { %v1717_v40 = vpop.permute.xlu0 %1716 }
0x15b8   :  { %v1719_v41 = vmul.f32 %v2598_v24, %v1717_v40 }
0x15ba   :  { %v1720_v42 = vpack.c.bf16 %v1719_v41, %v1719_v41 }
0x15bc   :  { %1722 = vrot.lane.b32.xlu0 %v1720_v42, %s3407_s1 }
0x15c3   :  { %v1646_v4 = vpop.permute.xlu1 %1645 }
0x15c4   :  { %v1648_v46 = vmul.f32 %v2600_v31, %v1646_v4 }
0x15c6   :  { %v1767_v6 = vpack.c.bf16 %v1648_v46, %v1648_v46 }
0x15c8   :  { %1769 = vrot.lane.b32.xlu1 %v1767_v6, %s3407_s1 }
0x162e   :  { %v1723_v47 = vpop.permute.xlu0 %1722 }
0x162f   :  { %2401 = vmatmul.mubr.msk.bf16.vlgmr.msra.gmra.mrb[36].mxu0 %vm60_vm0, %v1723_v47 }
0x1630   :  { %2405 = vmatpush3.bf16.msra.mxu0 %v2618_v48  ;;  %2408 = vmatprep.mubr.msk.bf16.mxu0 %vm2706_vm2, %v2705_v1 }
0x1631   :  { %2406 = vmatprep.subr.bf16.mxu0 %v2705_v1 }
0x1634   :  { %2407 = vmatpush3.bf16.msra.mxu0 %v2619_v50 }
0x163a   :  { %v1770_v51 = vpop.permute.xlu1 %1769 }
0x163b   :  { %2409 = vmatmul.mubr.msk.bf16.vlgmr.msra.gmra.mrb[36].mxu0 %vm60_vm0, %v1770_v51 }
0x170e   :  { %v1808_v52 = vpop.f32.mrb[36].mxu0 }
0x170f   :  { %v2431_v53 = vadd.f32 %v2997_v18, %v1808_v52  ;;  %v2410_v54 = vpop.f32.mrb[37].mxu0 }
0x1710   :  { %v1811_v43 = vpop.f32.mrb[38].mxu0 }
0x1711   :  { %2605 = vtanh.f32 %v2431_v53  ;;  %v2411_v55 = vpop.f32.mrb[39].mxu0  ;;  %v2116_v3 = vmul.f32 -1.442695, %v2431_v53 }
0x1713   :  { %2607 = vpow2.f32 %v2116_v3 }
0x171b   :  { %v2606_v56 = vpop.eup %2605 }
0x171c   :  { %1824 = vrot.lane.b32.xlu0 %v2606_v56, %s3406_s15 }
0x171d   :  { %v2608_v1 = vpop.eup %2607 }
0x171e   :  { %v1818_v59 = vadd.f32 1.0, %v2608_v1 }
0x1720   :  { %2609 = vrcp.f32 %v1818_v59 }
0x172a   :  { %v2610_v60 = vpop.eup %2609 }
0x172b   :  { %v1822_v18 = vmul.f32 %v2610_v60, %v1642_v39 }
0x178e   :  { %v1825_v61 = vpop.permute.xlu0 %1824 }
0x178f   :  { %v1827_v7 = vmul.f32 %v2610_v60, %v1825_v61 }
0x1791   :  { %1829 = vrot.lane.b32.xlu1 %v1827_v7, %s3407_s1 }
0x1795   :  { %510 = vrot.lane.b32.xlu1 %v3018_v57, %s3407_s1 }
0x1799   :  { %890 = vrot.lane.b32.xlu1 %v3106_v37, %s3407_s1  ;;  %v2483_v37 = vld [vmem:[%s3394_s10] sm:$0xff]   ;;  %s2710_s10 = smov [#allocation9]  }
0x179a   :  { %2412 = vmatprep.subr.bf16.mxu1 %v2483_v37 }
0x179b   :  { %2413 = vmatpush3.bf16.msra.mxu1 %v2483_v37 }
0x179c   :  { %2414 = vmatprep.subr.bf16.mxu1 %v2484_v29 }
0x179d   :  { %1270 = vrot.lane.b32.xlu1 %v3194_v14, %s3407_s1 }
0x179f   :  { %2415 = vmatpush3.bf16.msra.mxu1 %v2484_v29 }
0x17a1   :  { %1650 = vrot.lane.b32.xlu1 %v1648_v46, %s3407_s1 }
0x17a5   :  { %1845 = vrot.lane.b32.xlu1 %v1719_v41, %s3407_s1 }
0x1803   :  { %v1830_v62 = vpop.permute.xlu1 %1829 }
0x1804   :  { %v1832_v63 = vadd.f32 %v1830_v62, %v1822_v18 }
0x1806   :  { %2611 = vtanh.f32 %v1832_v63  ;;  %1857 = vrot.lane.b32.xlu1 %v1832_v63, %s2709_s8 }
0x1807   :  { %v511_v8 = vpop.permute.xlu1 %510 }
0x1808   :  { %513 = vst.msk [vmem:[#allocation4] sm:$0xff] %vm60_vm0, %v511_v8 }
0x180b   :  { %v891_v57 = vpop.permute.xlu1 %890 }
0x180c   :  { %893 = vst.msk [vmem:[#allocation4 + $0x10] sm:$0xff] %vm60_vm0, %v891_v57 }
0x180f   :  { %v1271_v14 = vpop.permute.xlu1 %1270 }
0x1810   :  { %v2612_v10 = vpop.eup %2611  ;;  %1273 = vst.msk [vmem:[#allocation4 + $0x20] sm:$0xff] %vm60_vm0, %v1271_v14 }
0x1811   :  { %1835 = vrot.lane.b32.xlu0 %v2612_v10, %s3406_s15  ;;  %s1999_s15 = sshll.u32 %s2710_s10, 4  ;;  %s2000_s15 = int_to_ptr.vmem [resolvable:$true] %s1999_s15 }
0x1812   :  { %p2637_p6 = scmp.lt.s32.totalorder %s2000_s15, %s2000_s15 }
0x1813   :  { %v1651_v11 = vpop.permute.xlu1 %1650  ;;  %v1864_v19 = vld [vmem:[#allocation4 + $0x10] sm:$0xff] }
0x1814   :  { %1653 = vst.msk [vmem:[#allocation4 + $0x30] sm:$0xff] %vm60_vm0, %v1651_v11 }
0x1815   :  { %700 = vrot.lane.b32.xlu0 %v3062_v49, %s3407_s1 }
0x1817   :  { %v1846_v9 = vpop.permute.xlu1 %1845  ;;  %v1866_v26 = vld [vmem:[#allocation4 + $0x20] sm:$0xff] }
0x1818   :  { %1848 = vst.msk [vmem:[#allocation9] sm:$0xff] %vm60_vm0, %v1846_v9 }
0x1819   :  { %1080 = vrot.lane.b32.xlu0 %v3150_v27, %s3407_s1  ;;  %v1862_v27 = vld [vmem:[#allocation4] sm:$0xff] }
0x181b   :  { %v1868_v24 = vld [vmem:[#allocation4 + $0x30] sm:$0xff] }
0x181d   :  { %1460 = vrot.lane.b32.xlu0 %v3242_v58, %s3407_s1 }
0x1878   :  { %v1858_v12 = vpop.permute.xlu1 %1857 }
0x1879   :  { %1861 = vst.msk [vmem:[#allocation11 + $0x8] sm:$0xff] %vm60_vm0, %v1858_v12 }
0x1883   :  { %v1836_v13 = vpop.permute.xlu0 %1835 }
0x1884   :  { %v1838_v15 = vmul.f32 %v2610_v60, %v1836_v13 }
0x1886   :  { %1840 = vrot.lane.b32.xlu0 %v1838_v15, %s3407_s1  ;;  %s2632_s1 = scalar_lea.vmem %s2000_s15, 256 }
0x1887   :  { %v701_v16 = vpop.permute.xlu0 %700  ;;  %p2633_p5 = scmp.ne.s32.totalorder %s2000_s15, %s2632_s1  ;;  %p2638_p7 = scmp.lt.s32.totalorder %s2632_s1, %s2632_s1 }
0x1888   :  { %703 = vst.msk [vmem:[#allocation4 + $0x8] sm:$0xff] %vm60_vm0, %v701_v16 }
0x1889   :  { %p2639_p8 = por %p2638_p7, %p2637_p6 }
0x188a   :  { %1850 = vrot.lane.b32.xlu0 %v3275_v0, %s2709_s8 }
0x188b   :  { %v1081_v49 = vpop.permute.xlu0 %1080  ;;  %p2640_p9 = pnand %p2639_p8, %p2633_p5 }
0x188c   :  { %1083 = vst.msk [vmem:[#allocation4 + $0x18] sm:$0xff] %vm60_vm0, %v1081_v49 }
0x188f   :  { %v1461_v17 = vpop.permute.xlu0 %1460  ;;  %v1863_v44 = vld [vmem:[#allocation4 + $0x8] sm:$0xff] }
0x1890   :  { %1463 = vst.msk [vmem:[#allocation4 + $0x28] sm:$0xff] %vm60_vm0, %v1461_v17  ;;  %v1870_v58 = vpack.c.bf16 %v1863_v44, %v1862_v27 }
0x1892   :  { %2416 = vmatprep.mubr.msk.bf16.mxu1 %vm60_vm0, %v1870_v58 }
0x1893   :  { %v1865_v45 = vld [vmem:[#allocation4 + $0x18] sm:$0xff] }
0x1894   :  { %v1871_v5 = vpack.c.bf16 %v1865_v45, %v1864_v19 }
0x1896   :  { %2417 = vmatmul.mubr.msk.bf16.vlgmr.msra.gmra.mrb[32].mxu1 %vm60_vm0, %v1871_v5 }
0x1897   :  { %v1867_v20 = vld [vmem:[#allocation4 + $0x28] sm:$0xff] }
0x1898   :  { %v1872_v21 = vpack.c.bf16 %v1867_v20, %v1866_v26 }
0x189a   :  { %2420 = vmatprep.mubr.msk.bf16.mxu1 %vm60_vm0, %v1872_v21 }
0x18f8   :  { %v1841_v22 = vpop.permute.xlu0 %1840 }
0x18f9   :  { %1843 = vst.msk [vmem:[#allocation4 + $0x38] sm:$0xff] %vm60_vm0, %v1841_v22  ;;  %1855 = vst.msk [vmem:[#allocation9 + $0x8] sm:$0xff] %vm60_vm0, %v1841_v22 }
0x18fc   :  { %v1851_v23 = vpop.permute.xlu0 %1850 }
0x18fd   :  { %1853 = vst.msk [vmem:[#allocation11] sm:$0xff] %vm60_vm0, %v1851_v23 }
0x1900   :  { %v1869_v28 = vld [vmem:[#allocation4 + $0x38] sm:$0xff] }
0x1901   :  { %v1873_v30 = vpack.c.bf16 %v1869_v28, %v1868_v24 }
0x1903   :  { %2421 = vmatmul.mubr.msk.bf16.gmra.mrb[36].mxu1 %vm60_vm0, %v1873_v30 }
0x1904   :  { %2643 = shalt.err (!%p2640_p9)
}
0x1905   :  { %s2644_s12 = scalar_lea.hbm %s3397_s13, 256 }
0x1906   :  { %p2645_p10 = scmp.ne.s32.totalorder %s3397_s13, %s2644_s12  ;;  %p2648_p11 = scmp.lt.u32.totalorder %s2644_s12, %s3397_s13 }
0x1908   :  { %p2650_p12 = pnand %p2648_p11, %p2645_p10 }
0x190a   :  { %2653 = shalt.err (!%p2650_p12)
}
0x190b   :  { %s2711_s3 = smov 128   ;;  %s2712_s9 = smov 8  }
0x190c   :  { %2005 = dma.vmem_to_hbm [thread:$0]  %s2000_s15, 256, %s3397_s13, [#allocation10], %s2711_s3, %s2711_s3, %s2712_s9  }
0x190d   :  { %s2713_s5 = smov [#allocation11]  }
0x190e   :  { %s2011_s30 = sshll.u32 %s2713_s5, 4  ;;  %s2012_s30 = int_to_ptr.vmem [resolvable:$true] %s2011_s30 }
0x190f   :  { %s2654_s18 = scalar_lea.vmem %s2012_s30, 256  ;;  %p2659_p0 = scmp.lt.s32.totalorder %s2012_s30, %s2012_s30 }
0x1910   :  { %p2655_p13 = scmp.ne.s32.totalorder %s2012_s30, %s2654_s18  ;;  %p2660_p1 = scmp.lt.s32.totalorder %s2654_s18, %s2654_s18 }
0x1912   :  { %p2661_p2 = por %p2660_p1, %p2659_p0 }
0x1914   :  { %p2662_p3 = pnand %p2661_p2, %p2655_p13 }
0x1916   :  { %2665 = shalt.err (!%p2662_p3)
}
0x1917   :  { %s2666_s16 = scalar_lea.hbm %s3398_s14, 256 }
0x1918   :  { %p2667_p4 = scmp.ne.s32.totalorder %s3398_s14, %s2666_s16  ;;  %p2670_p5 = scmp.lt.u32.totalorder %s2666_s16, %s3398_s14 }
0x191a   :  { %p2672_p6 = pnand %p2670_p5, %p2667_p4 }
0x191c   :  { %2675 = shalt.err (!%p2672_p6)
}
0x191d   :  { %2017 = dma.vmem_to_hbm [thread:$0]  %s2012_s30, 256, %s3398_s14, [#allocation10], %s2711_s3, %s2711_s3, %s2712_s9  }
0x191e   :  { %s3408_s20 = sld [smem:[#allocation15_spill]]  ;;  %s2714_s14 = smov [#allocation8]  }
0x191f   :  { %s1987_s21 = sshll.u32 %s2714_s14, 4  ;;  %s1988_s21 = int_to_ptr.vmem [resolvable:$true] %s1987_s21 }
0x1920   :  { %s2676_s10 = scalar_lea.vmem %s1988_s21, 1024  ;;  %p2681_p8 = scmp.lt.s32.totalorder %s1988_s21, %s1988_s21 }
0x1921   :  { %p2677_p7 = scmp.ne.s32.totalorder %s1988_s21, %s2676_s10  ;;  %p2682_p9 = scmp.lt.s32.totalorder %s2676_s10, %s2676_s10 }
0x1923   :  { %p2683_p10 = por %p2682_p9, %p2681_p8 }
0x1924   :  { %v2117_v31 = vld [vmem:[%s3408_s20] ss:$0 sm:$0xff] }
0x1925   :  { %p2684_p11 = pnand %p2683_p10, %p2677_p7 }
0x1969   :  { %v2418_v32 = vpop.f32.mrb[32].mxu1 }
0x196a   :  { %v1952_v33 = vadd.f32 %v2418_v32, %v2117_v31  ;;  %v1943_v34 = vpop.f32.mrb[33].mxu1 }
0x196b   :  { %v1944_v25 = vadd.f32 %v2117_v31, %v1943_v34  ;;  %v2419_v0 = vpop.f32.mrb[34].mxu1 }
0x196c   :  { %1976 = vst [vmem:[#allocation8 + $0x10] sm:$0xff] %v1952_v33  ;;  %v1955_v35 = vadd.f32 %v2419_v0, %v2117_v31  ;;  %v1946_v36 = vpop.f32.mrb[35].mxu1 }
0x196d   :  { %1974 = vst [vmem:[#allocation8] sm:$0xff] %v1944_v25  ;;  %v1947_v38 = vadd.f32 %v2117_v31, %v1946_v36 }
0x196e   :  { %1977 = vst [vmem:[#allocation8 + $0x18] sm:$0xff] %v1955_v35 }
0x196f   :  { %1975 = vst [vmem:[#allocation8 + $0x8] sm:$0xff] %v1947_v38 }
0x19d6   :  { %v2422_v39 = vpop.f32.mrb[36].mxu1 }
0x19d7   :  { %v1968_v2 = vadd.f32 %v2422_v39, %v2117_v31  ;;  %v1959_v40 = vpop.f32.mrb[37].mxu1 }
0x19d8   :  { %v1960_v41 = vadd.f32 %v2117_v31, %v1959_v40  ;;  %v2423_v42 = vpop.f32.mrb[38].mxu1 }
0x19d9   :  { %1980 = vst [vmem:[#allocation8 + $0x30] sm:$0xff] %v1968_v2  ;;  %v1971_v4 = vadd.f32 %v2423_v42, %v2117_v31  ;;  %v1962_v46 = vpop.f32.mrb[39].mxu1 }
0x19da   :  { %1978 = vst [vmem:[#allocation8 + $0x20] sm:$0xff] %v1960_v41  ;;  %v1963_v6 = vadd.f32 %v2117_v31, %v1962_v46 }
0x19db   :  { %1981 = vst [vmem:[#allocation8 + $0x38] sm:$0xff] %v1971_v4 }
0x19dc   :  { %1979 = vst [vmem:[#allocation8 + $0x28] sm:$0xff] %v1963_v6 }
0x19dd   :  { %2687 = shalt.err (!%p2684_p11)
}
0x19de   :  { %s3409_s24 = sld [smem:[#allocation16_spill]] }
0x19e4   :  { %s2688_s25 = scalar_lea.hbm %s3409_s24, 1024 }
0x19e5   :  { %p2689_p12 = scmp.ne.s32.totalorder %s3409_s24, %s2688_s25  ;;  %p2692_p13 = scmp.lt.u32.totalorder %s2688_s25, %s3409_s24 }
0x19e7   :  { %p2694_p0 = pnand %p2692_p13, %p2689_p12 }
0x19e9   :  { %2697 = shalt.err (!%p2694_p0)
}
0x19ea   :  { %1993 = dma.vmem_to_hbm [thread:$0]  %s1988_s21, 1024, %s3409_s24, [#allocation6], %s2711_s3, %s2711_s3, %s2712_s9  }
0x19eb   :  { %2700 = dma.done.wait [#allocation6], 1024  }
0x19ec   :  { %2701 = vsyncadd [#allocation6], 4294966272 }
0x19ed   :  { %2702 = dma.done.wait [#allocation10], 512  }
0x19ee   :  { %2703 = vsyncadd [#allocation10], 4294966784 }
0x19ef   :  { %2027 = vsyncpa [#allocation6], 1 }
0x19f0   :  { %2028 = vsyncpa [#allocation10], 1 }
0x19f1   :  { %2029 = vsyncpa [#allocation7], 1 }

</bundles_post_ra>
